<compile_context>
chip_gen: v7x
topology: tpu7x:2x2x1
jax: 0.10.0
libtpu: 0.0.40
codegen_flags: <defaults>
</compile_context>

<pallas_src>
import math
import functools

import jax
import jax.numpy as jnp
from jax import lax
from jax.experimental import pallas as pl
from jax.experimental.pallas import tpu as pltpu


def _round_up(x, m):
    return ((x + m - 1) // m) * m


def _vmem_budget():
    """Generation-aware scoped-VMEM budget (~75% of physical VMEM)."""
    try:
        cap = int(pltpu.get_tpu_info().vmem_capacity_bytes)
    except Exception:
        cap = 64 * 1024 * 1024          # conservative (v7x) fallback
    return max(32 * 1024 * 1024, (cap * 3) // 4)


_VMEM_BUDGET = _vmem_budget()
# larger row tiles on 128-MiB-VMEM chips (v5e/v6e), smaller on v7x (64 MiB)
_HW_TILE_CAP = 1024 if _VMEM_BUDGET >= 80 * 1024 * 1024 else 512
_HEADS_TILE_N = 256                      # row tile for the fused prediction heads


# ---------------------------------------------------------------------------
# Kernel 1a: 1x1-conv (channel matmul) + per-image GroupNorm stats accumulation
# ---------------------------------------------------------------------------
def _proj_stats_kernel(x_ref, w_ref, b_ref, y_ref, stats_ref, *, hw, tile,
                       t_per_par):
    """x_ref: (TILE, Cin) bf16, w_ref: (Cin, D) bf16, b_ref: (1, D) f32.
    y_ref: (TILE, D) bf16 un-normalized projection (downcast of the f32 dot).
    stats_ref: (2, D) f32 accumulator (row 0: sum, row 1: sum of squares),
               resident across the HW-tile ("arbitrary") grid axis.
    Padded rows (global row >= hw) are masked out of the stats."""
    p = pl.program_id(1)
    t = pl.program_id(2)

    y = jnp.dot(x_ref[...], w_ref[...],
                preferred_element_type=jnp.float32) + b_ref[...]
    y_ref[...] = y.astype(y_ref.dtype)

    base = (p * t_per_par + t) * tile
    row = base + lax.broadcasted_iota(jnp.int32, (tile, 1), 0)
    valid = (row < hw).astype(jnp.float32)          # (TILE, 1)
    ym = y * valid
    s1 = jnp.sum(ym, axis=0, keepdims=True)         # (1, D)
    s2 = jnp.sum(ym * ym, axis=0, keepdims=True)    # (1, D)
    part = jnp.concatenate([s1, s2], axis=0)        # (2, D)

    @pl.when(t == 0)
    def _():
        stats_ref[...] = jnp.zeros_like(stats_ref)

    stats_ref[...] += part


# ---------------------------------------------------------------------------
# Kernel 1b: GroupNorm affine epilogue (per-channel scale / shift)
# ---------------------------------------------------------------------------
def _gn_affine_kernel(y_ref, scale_ref, shift_ref, o_ref):
    y = y_ref[...].astype(jnp.float32)
    o_ref[...] = (y * scale_ref[...] + shift_ref[...]).astype(o_ref.dtype)


def input_proj_groupnorm(src_nhwc, w, b, gamma, beta, num_groups=32, eps=1e-5):
    """src_nhwc: (B, H, W, Cin) -> (B, H, W, D) bf16. Conv 1x1 + GroupNorm."""
    B, H, W, Cin = src_nhwc.shape
    D = w.shape[1]
    assert D % num_groups == 0
    gsize = D // num_groups
    HW = H * W

    # row tile: as large as the VMEM budget allows; HW is padded to a multiple
    tile = min(_HW_TILE_CAP, _round_up(HW, 8))
    while tile > 8:
        # bf16 x + bf16 y, double-buffered, + resident weights + small f32 bits
        step_bytes = 4 * tile * (Cin + D) * 2 + Cin * D * 2 + 16 * D * 4
        if step_bytes <= _VMEM_BUDGET:
            break
        tile //= 2
    tile = max(8, (tile // 8) * 8)

    n_tiles = -(-HW // tile)
    # extra "parallel" chunk axis so a B==1 call can still use both v7x TCs
    n_par = 2 if (B == 1 and n_tiles >= 2) else 1
    t_per_par = -(-n_tiles // n_par)
    hw_pad = n_par * t_per_par * tile

    x = src_nhwc.reshape(B, HW, Cin)
    if hw_pad != HW:
        x = jnp.concatenate(
            [x, jnp.zeros((B, hw_pad - HW, Cin), x.dtype)], axis=1)
    x = x.astype(jnp.bfloat16)
    w_bf = w.astype(jnp.bfloat16)
    b_row = b.reshape(1, D).astype(jnp.float32)

    kern_a = functools.partial(_proj_stats_kernel, hw=HW, tile=tile,
                               t_per_par=t_per_par)
    y, stats = pl.pallas_call(
        kern_a,
        out_shape=(jax.ShapeDtypeStruct((B, hw_pad, D), jnp.bfloat16),
                   jax.ShapeDtypeStruct((B * n_par, 2, D), jnp.float32)),
        grid_spec=pltpu.PrefetchScalarGridSpec(
            num_scalar_prefetch=0,
            grid=(B, n_par, t_per_par),
            in_specs=[
                pl.BlockSpec((None, tile, Cin),
                             lambda bi, p, t, tp=t_per_par: (bi, p * tp + t, 0)),
                pl.BlockSpec((Cin, D), lambda bi, p, t: (0, 0)),
                pl.BlockSpec((1, D), lambda bi, p, t: (0, 0)),
            ],
            out_specs=(
                pl.BlockSpec((None, tile, D),
                             lambda bi, p, t, tp=t_per_par: (bi, p * tp + t, 0)),
                pl.BlockSpec((None, 2, D),
                             lambda bi, p, t, npar=n_par: (bi * npar + p, 0, 0)),
            ),
        ),
        compiler_params=pltpu.CompilerParams(
            dimension_semantics=("parallel", "parallel", "arbitrary"),
            vmem_limit_bytes=_VMEM_BUDGET),
    )(x, w_bf, b_row)

    # Tiny per-image group-stat math (B x D) as plain XLA ops.
    # TODO(synk): single-pass E[y^2]-E[y]^2 can cancel for very large activation
    #             magnitudes; a centered two-pass would be needed in that regime.
    stats = stats.reshape(B, n_par, 2, D).sum(axis=1)         # (B, 2, D)
    mean_c = stats[:, 0, :] / HW                              # (B, D)
    ex2_c = stats[:, 1, :] / HW                               # (B, D)
    mean_g = mean_c.reshape(B, num_groups, gsize).mean(axis=-1)
    ex2_g = ex2_c.reshape(B, num_groups, gsize).mean(axis=-1)
    var_g = ex2_g - mean_g * mean_g                           # biased var (PyTorch GN)
    inv_g = lax.rsqrt(var_g + eps)
    inv_c = jnp.repeat(inv_g, gsize, axis=-1)                 # (B, D)
    mean_cb = jnp.repeat(mean_g, gsize, axis=-1)              # (B, D)
    scale = gamma[None, :].astype(jnp.float32) * inv_c
    shift = beta[None, :].astype(jnp.float32) - mean_cb * scale

    out = pl.pallas_call(
        _gn_affine_kernel,
        out_shape=jax.ShapeDtypeStruct((B, hw_pad, D), jnp.bfloat16),
        grid_spec=pltpu.PrefetchScalarGridSpec(
            num_scalar_prefetch=0,
            grid=(B, hw_pad // tile),
            in_specs=[
                pl.BlockSpec((None, tile, D), lambda bi, t: (bi, t, 0)),
                pl.BlockSpec((None, 1, D), lambda bi, t: (bi, 0, 0)),
                pl.BlockSpec((None, 1, D), lambda bi, t: (bi, 0, 0)),
            ],
            out_specs=pl.BlockSpec((None, tile, D), lambda bi, t: (bi, t, 0)),
        ),
        compiler_params=pltpu.CompilerParams(
            dimension_semantics=("parallel", "parallel"),
            vmem_limit_bytes=_VMEM_BUDGET),
    )(y, scale[:, None, :], shift[:, None, :])
    return out[:, :HW].reshape(B, H, W, D)


# ---------------------------------------------------------------------------
# Kernel 2: fused prediction heads — one wide matmul (lane-aligned segments)
#           + two small per-head MLP matmuls per layer, lane-dense output slab.
# ---------------------------------------------------------------------------
def _heads_kernel(h_ref, wa_ref, ba_ref, w2s_ref, b2s_ref, w2o_ref, b2o_ref,
                  w3s_ref, b3s_ref, w3o_ref, b3o_ref, o_ref, *, seg, n_logit):
    h = h_ref[...]                                            # (T, D) bf16

    # one MXU pass: [sub_mlp_l1 | obj_mlp_l1 | sub_cls obj_cls verb_cls]
    # each segment zero-padded to a multiple of 128 lanes, so splits are aligned
    a = jnp.dot(h, wa_ref[...], preferred_element_type=jnp.float32) + ba_ref[...]
    t1s = jnp.maximum(a[:, :seg], 0.0)                        # (T, seg)
    t1o = jnp.maximum(a[:, seg:2 * seg], 0.0)                 # (T, seg)
    logits = a[:, 2 * seg:2 * seg + n_logit]                  # (T, n_logit)

    t2s = jnp.maximum(
        jnp.dot(t1s.astype(h.dtype), w2s_ref[...],
                preferred_element_type=jnp.float32) + b2s_ref[...], 0.0)
    t2o = jnp.maximum(
        jnp.dot(t1o.astype(h.dtype), w2o_ref[...],
                preferred_element_type=jnp.float32) + b2o_ref[...], 0.0)
    bs = jax.nn.sigmoid(
        jnp.dot(t2s.astype(h.dtype), w3s_ref[...],
                preferred_element_type=jnp.float32) + b3s_ref[...])   # (T, 4)
    bo = jax.nn.sigmoid(
        jnp.dot(t2o.astype(h.dtype), w3o_ref[...],
                preferred_element_type=jnp.float32) + b3o_ref[...])   # (T, 4)

    # write only the real columns; pad lanes of the slab stay untouched
    o_ref[:, :n_logit + 8] = jnp.concatenate([logits, bs, bo], axis=-1)


def _pad_cols(a, to):
    if a.shape[1] == to:
        return a
    return jnp.concatenate(
        [a, jnp.zeros((a.shape[0], to - a.shape[1]), a.dtype)], axis=1)


def _pad_rows(a, to):
    if a.shape[0] == to:
        return a
    return jnp.concatenate(
        [a, jnp.zeros((to - a.shape[0],) + a.shape[1:], a.dtype)], axis=0)


def _pad_vec(v, to):
    if v.shape[0] == to:
        return v
    return jnp.concatenate([v, jnp.zeros((to - v.shape[0],), v.dtype)])


def run_heads(hs, params, num_obj_classes, num_verb_classes):
    """hs: (L, B, Q, D). Weights shared across decoder layers (no box refine)."""
    L, B, Q, D = hs.shape
    N = L * B * Q
    nc = num_obj_classes + 1
    nv = num_verb_classes
    n_logit = 2 * nc + nv

    seg = _round_up(D, 128)            # per-head mlp-l1 segment (lane-aligned)
    logit_seg = _round_up(n_logit, 128)

    # keep >= 2 grid steps when possible so both v7x TCs get work
    tile_n = _HEADS_TILE_N if N > _HEADS_TILE_N else 128
    n_pad = _round_up(max(N, 1), tile_n)

    h = hs.reshape(N, D)
    if n_pad != N:
        h = jnp.concatenate([h, jnp.zeros((n_pad - N, D), h.dtype)], axis=0)
    h = h.astype(jnp.bfloat16)

    f32 = lambda v: v.astype(jnp.float32)
    bf16 = lambda v: v.astype(jnp.bfloat16)

    # fused layer-1: [ws1 pad | wo1 pad | (wsc|woc|wvc) pad]  (D, 2*seg+logit_seg)
    cls_w = jnp.concatenate(
        [params["sub_cls_w"], params["obj_cls_w"], params["verb_cls_w"]], axis=1)
    cls_b = jnp.concatenate(
        [params["sub_cls_b"], params["obj_cls_b"], params["verb_cls_b"]])
    wa = jnp.concatenate(
        [_pad_cols(params["sub_mlp_w1"], seg),
         _pad_cols(params["obj_mlp_w1"], seg),
         _pad_cols(cls_w, logit_seg)], axis=1)
    ba = jnp.concatenate(
        [_pad_vec(params["sub_mlp_b1"], seg),
         _pad_vec(params["obj_mlp_b1"], seg),
         _pad_vec(cls_b, logit_seg)])[None, :]

    # per-head layer 2 / layer 3 (no zero block-diagonal MXU work)
    w2s = _pad_rows(params["sub_mlp_w2"], seg)   # (seg, D) — padded rows hit
    w2o = _pad_rows(params["obj_mlp_w2"], seg)   # zero activations, harmless
    b2s = params["sub_mlp_b2"][None, :]
    b2o = params["obj_mlp_b2"][None, :]
    w3s = params["sub_mlp_w3"]                   # (D, 4)
    w3o = params["obj_mlp_w3"]
    b3s = params["sub_mlp_b3"][None, :]
    b3o = params["obj_mlp_b3"][None, :]

    out_pad = _round_up(n_logit + 8, 128)        # lane-dense output slab
    kernel = functools.partial(_heads_kernel, seg=seg, n_logit=n_logit)
    const = lambda i: (0, 0)
    out = pl.pallas_call(
        kernel,
        out_shape=jax.ShapeDtypeStruct((n_pad, out_pad), jnp.float32),
        grid_spec=pltpu.PrefetchScalarGridSpec(
            num_scalar_prefetch=0,
            grid=(n_pad // tile_n,),
            in_specs=[
                pl.BlockSpec((tile_n, D), lambda i: (i, 0)),
                pl.BlockSpec(wa.shape, const),
                pl.BlockSpec(ba.shape, const),
                pl.BlockSpec(w2s.shape, const),
                pl.BlockSpec(b2s.shape, const),
                pl.BlockSpec(w2o.shape, const),
                pl.BlockSpec(b2o.shape, const),
                pl.BlockSpec(w3s.shape, const),
                pl.BlockSpec(b3s.shape, const),
                pl.BlockSpec(w3o.shape, const),
                pl.BlockSpec(b3o.shape, const),
            ],
            out_specs=pl.BlockSpec((tile_n, out_pad), lambda i: (i, 0)),
        ),
        compiler_params=pltpu.CompilerParams(
            dimension_semantics=("parallel",),
            vmem_limit_bytes=_VMEM_BUDGET),
    )(h, bf16(wa), f32(ba), bf16(w2s), f32(b2s), bf16(w2o), f32(b2o),
      bf16(w3s), f32(b3s), bf16(w3o), f32(b3o))

    out = out[:N]
    sub_log = out[:, 0:nc].reshape(L, B, Q, nc)
    obj_log = out[:, nc:2 * nc].reshape(L, B, Q, nc)
    verb_log = out[:, 2 * nc:n_logit].reshape(L, B, Q, nv)
    sub_box = out[:, n_logit:n_logit + 4].reshape(L, B, Q, 4)
    obj_box = out[:, n_logit + 4:n_logit + 8].reshape(L, B, Q, 4)
    return sub_log, obj_log, verb_log, sub_box, obj_box


# ---------------------------------------------------------------------------
# Parameter construction (deterministic; mirrors VRDFormer.__init__)
# ---------------------------------------------------------------------------
def make_params(key, hidden_dim, num_obj_classes, num_verb_classes, num_queries,
                backbone_channels):
    keys = iter(jax.random.split(key, 64))
    D = hidden_dim
    nc = num_obj_classes + 1
    nv = num_verb_classes
    bias_value = -math.log((1 - 0.01) / 0.01)

    def linear_w(k, fin, fout):
        bound = 1.0 / math.sqrt(fin)
        return jax.random.uniform(k, (fin, fout), jnp.float32, -bound, bound)

    p = {}
    p["query_embed"] = jax.random.normal(next(keys), (num_queries, 2 * D), jnp.float32)

    # class heads: weight ~ default Linear init, bias = bias_value
    p["sub_cls_w"] = linear_w(next(keys), D, nc)
    p["sub_cls_b"] = jnp.full((nc,), bias_value, jnp.float32)
    p["obj_cls_w"] = linear_w(next(keys), D, nc)
    p["obj_cls_b"] = jnp.full((nc,), bias_value, jnp.float32)
    p["verb_cls_w"] = linear_w(next(keys), D, nv)
    p["verb_cls_b"] = jnp.full((nv,), bias_value, jnp.float32)

    # bbox MLPs: last layer weight = 0, bias = [0, 0, -2, -2]
    last_b = jnp.array([0.0, 0.0, -2.0, -2.0], jnp.float32)
    for name in ("sub", "obj"):
        p[f"{name}_mlp_w1"] = linear_w(next(keys), D, D)
        p[f"{name}_mlp_b1"] = jnp.zeros((D,), jnp.float32)
        p[f"{name}_mlp_w2"] = linear_w(next(keys), D, D)
        p[f"{name}_mlp_b2"] = jnp.zeros((D,), jnp.float32)
        p[f"{name}_mlp_w3"] = jnp.zeros((D, 4), jnp.float32)
        p[f"{name}_mlp_b3"] = last_b

    # input_proj per level: 1x1 conv (xavier_uniform, bias 0) + GroupNorm(32, D)
    p["input_proj"] = []
    for cin in backbone_channels:
        bound = math.sqrt(6.0 / (cin + D))
        w = jax.random.uniform(next(keys), (cin, D), jnp.float32, -bound, bound)
        p["input_proj"].append({
            "w": w,
            "b": jnp.zeros((D,), jnp.float32),
            "gamma": jnp.ones((D,), jnp.float32),
            "beta": jnp.zeros((D,), jnp.float32),
        })
    return p


# ---------------------------------------------------------------------------
# VRDFormer forward (non-deformable, single-frame, 3 feature levels)
# ---------------------------------------------------------------------------
def vrdformer_forward(features_nhwc, masks, hs_raw, memory_raw, params,
                      num_obj_classes, num_verb_classes, aux_loss=True):
    """
    features_nhwc: list of (B, Hl, Wl, Cl) backbone feature maps (NHWC)
    masks:         list of (B, Hl, Wl) bool padding masks
    hs_raw:        (L, Q, B, D)  synthetic transformer decoder output
    memory_raw:    (S_total, B, D) synthetic transformer encoder memory
    """
    D = hs_raw.shape[-1]

    # --- input projection (Pallas: conv1x1 matmul + GroupNorm, tiled) ---
    src_list, mask_list, level_hw = [], [], []
    for l, feat in enumerate(features_nhwc):
        pp = params["input_proj"][l]
        src = input_proj_groupnorm(feat, pp["w"], pp["b"], pp["gamma"], pp["beta"])
        src_list.append(src)
        mask_list.append(masks[l])
        level_hw.append((feat.shape[1], feat.shape[2]))

    # --- non-deformable transposes (as in reference forward) ---
    hs = jnp.transpose(hs_raw, (0, 2, 1, 3))        # (L, B, Q, D)
    memory = jnp.transpose(memory_raw, (1, 0, 2))   # (B, S_total, D)

    # --- prediction heads (Pallas fused kernel, shared weights across layers) ---
    sub_log, obj_log, verb_log, sub_box, obj_box = run_heads(
        hs, params, num_obj_classes, num_verb_classes)

    out = {
        "pred_sub_logits": sub_log[-1],
        "pred_obj_logits": obj_log[-1],
        "pred_verb_logits": verb_log[-1],
        "pred_sub_boxes": sub_box[-1],
        "pred_obj_boxes": obj_box[-1],
        "hs_embed": hs[-1],
    }
    if aux_loss:
        out["aux_outputs"] = [
            {"pred_sub_logits": a, "pred_obj_logits": b, "pred_verb_logits": c,
             "pred_sub_boxes": d, "pred_obj_boxes": e}
            for a, b, c, d, e in zip(sub_log[:-1], obj_log[:-1], verb_log[:-1],
                                     sub_box[:-1], obj_box[:-1])
        ]

    # --- memory slicing back to per-level spatial maps (glue, NCHW like torch) ---
    B = memory.shape[0]
    assert B < 10
    offset = 0
    memory_slices = []
    for (H, W) in level_hw:
        sl = memory[:, offset:offset + H * W]                 # (B, HW, D)
        memory_slices.append(jnp.transpose(sl, (0, 2, 1)).reshape(B, D, H, W))
        offset += H * W

    return out, None, features_nhwc, memory_slices, hs


# ---------------------------------------------------------------------------
if __name__ == "__main__":
    # small config
    B = 2
    hidden_dim = 32           # divisible by 32 (GroupNorm groups)
    num_queries = 16
    num_obj_classes = 7
    num_verb_classes = 8
    num_dec_layers = 2
    backbone_channels = [8, 16, 32]
    spatial = [(16, 16), (8, 8), (4, 4)]
    num_groups = 32

    key = jax.random.PRNGKey(0)
    kp, kf, kh, km = jax.random.split(key, 4)
    params = make_params(kp, hidden_dim, num_obj_classes, num_verb_classes,
                         num_queries, backbone_channels)

    # synthetic backbone features (NHWC) + masks (all valid)
    fkeys = jax.random.split(kf, len(backbone_channels))
    features = [jax.random.normal(fkeys[l], (B, h, w, c), jnp.float32)
                for l, ((h, w), c) in enumerate(zip(spatial, backbone_channels))]
    masks = [jnp.zeros((B, h, w), jnp.bool_) for (h, w) in spatial]

    # synthetic transformer outputs (pre-transpose shapes, as a DETR transformer)
    S_total = sum(h * w for (h, w) in spatial)
    hs_raw = jax.random.normal(kh, (num_dec_layers, num_queries, B, hidden_dim),
                               jnp.float32)
    memory_raw = jax.random.normal(km, (S_total, B, hidden_dim), jnp.float32)

    fwd = jax.jit(functools.partial(vrdformer_forward,
                                    num_obj_classes=num_obj_classes,
                                    num_verb_classes=num_verb_classes,
                                    aux_loss=True))
    out, targets, features_all, memory_slices, hs = fwd(
        features, masks, hs_raw, memory_raw, params)

    jax.block_until_ready(out["pred_sub_logits"])
    jax.block_until_ready(out["pred_obj_boxes"])
    jax.block_until_ready(memory_slices[-1])
    jax.block_until_ready(hs)

    # light sanity checks on shapes
    assert out["pred_sub_logits"].shape == (B, num_queries, num_obj_classes + 1)
    assert out["pred_verb_logits"].shape == (B, num_queries, num_verb_classes)
    assert out["pred_sub_boxes"].shape == (B, num_queries, 4)
    assert memory_slices[0].shape == (B, hidden_dim, 16, 16)
    assert len(out["aux_outputs"]) == num_dec_layers - 1

    # box heads: last MLP layer is zero-weight / bias [0,0,-2,-2] -> deterministic
    expected_box = jax.nn.sigmoid(jnp.array([0.0, 0.0, -2.0, -2.0], jnp.float32))
    assert bool(jnp.allclose(out["pred_sub_boxes"][0, 0], expected_box, atol=1e-5))
    assert bool(jnp.allclose(out["pred_obj_boxes"][0, 0], expected_box, atol=1e-5))

    # GroupNorm self-consistency: gamma=1, beta=0 => per (image, group) mean ~ 0,
    # var ~ 1 for the projected+normalized level-0 feature map (bf16 output, so
    # tolerances account for bf16 quantization of the stored intermediates).
    pp0 = params["input_proj"][0]
    src0 = input_proj_groupnorm(features[0], pp0["w"], pp0["b"],
                                pp0["gamma"], pp0["beta"],
                                num_groups=num_groups).astype(jnp.float32)
    HW0 = spatial[0][0] * spatial[0][1]
    g = src0.reshape(B, HW0, num_groups, hidden_dim // num_groups)
    gm = g.mean(axis=(1, 3))
    gv = g.var(axis=(1, 3))
    assert float(jnp.max(jnp.abs(gm))) < 5e-3
    assert float(jnp.max(jnp.abs(gv - 1.0))) < 2e-2

    print("KERNEL_OK")
</pallas_src>

<mosaic_0001>
module attributes {stable_mosaic.version = 11 : i64} {
  func.func @_heads_kernel(%arg0: i32, %arg1: memref<128x32xbf16, #tpu.memory_space<vmem>>, %arg2: memref<32x384xbf16, #tpu.memory_space<vmem>>, %arg3: memref<1x384xf32, #tpu.memory_space<vmem>>, %arg4: memref<128x32xbf16, #tpu.memory_space<vmem>>, %arg5: memref<1x32xf32, #tpu.memory_space<vmem>>, %arg6: memref<128x32xbf16, #tpu.memory_space<vmem>>, %arg7: memref<1x32xf32, #tpu.memory_space<vmem>>, %arg8: memref<32x4xbf16, #tpu.memory_space<vmem>>, %arg9: memref<1x4xf32, #tpu.memory_space<vmem>>, %arg10: memref<32x4xbf16, #tpu.memory_space<vmem>>, %arg11: memref<1x4xf32, #tpu.memory_space<vmem>>, %arg12: memref<128x128xf32, #tpu.memory_space<vmem>>) attributes {dimension_semantics = [#tpu.dimension_semantics<parallel>], iteration_bounds = array<i64: 1>, scalar_prefetch = 0 : i64, scratch_operands = 0 : i64, tpu.core_type = #tpu.core_type<tc>, window_params = [{transform_indices = @transform_0, window_bounds = array<i64: 128, 32>}, {pipeline_mode = #tpu.pipeline_mode<synchronous>, transform_indices = @transform_1, window_bounds = array<i64: 32, 384>}, {pipeline_mode = #tpu.pipeline_mode<synchronous>, transform_indices = @transform_2, window_bounds = array<i64: 1, 384>}, {pipeline_mode = #tpu.pipeline_mode<synchronous>, transform_indices = @transform_3, window_bounds = array<i64: 128, 32>}, {pipeline_mode = #tpu.pipeline_mode<synchronous>, transform_indices = @transform_4, window_bounds = array<i64: 1, 32>}, {pipeline_mode = #tpu.pipeline_mode<synchronous>, transform_indices = @transform_5, window_bounds = array<i64: 128, 32>}, {pipeline_mode = #tpu.pipeline_mode<synchronous>, transform_indices = @transform_6, window_bounds = array<i64: 1, 32>}, {pipeline_mode = #tpu.pipeline_mode<synchronous>, transform_indices = @transform_7, window_bounds = array<i64: 32, 4>}, {pipeline_mode = #tpu.pipeline_mode<synchronous>, transform_indices = @transform_8, window_bounds = array<i64: 1, 4>}, {pipeline_mode = #tpu.pipeline_mode<synchronous>, transform_indices = @transform_9, window_bounds = array<i64: 32, 4>}, {pipeline_mode = #tpu.pipeline_mode<synchronous>, transform_indices = @transform_10, window_bounds = array<i64: 1, 4>}, {transform_indices = @transform_11, window_bounds = array<i64: 128, 128>}]} {
    %c0 = arith.constant 0 : index
    %c0_0 = arith.constant 0 : index
    %0 = vector.load %arg1[%c0, %c0_0] : memref<128x32xbf16, #tpu.memory_space<vmem>>, vector<128x32xbf16>
    %c0_1 = arith.constant 0 : index
    %c0_2 = arith.constant 0 : index
    %1 = vector.load %arg2[%c0_1, %c0_2] : memref<32x384xbf16, #tpu.memory_space<vmem>>, vector<32x384xbf16>
    %cst = arith.constant dense<0.000000e+00> : vector<128x384xf32>
    %2 = tpu.matmul %0, %1, %cst {dimension_numbers = #tpu.dot_dimension_numbers<[1], [0], [0], [1], [0, 0, 1, 1], [], []>} : vector<128x32xbf16>, vector<32x384xbf16>, vector<128x384xf32> -> vector<128x384xf32>
    %c0_3 = arith.constant 0 : index
    %c0_4 = arith.constant 0 : index
    %3 = vector.load %arg3[%c0_3, %c0_4] : memref<1x384xf32, #tpu.memory_space<vmem>>, vector<1x384xf32>
    %4 = vector.broadcast %3 : vector<1x384xf32> to vector<128x384xf32>
    %5 = arith.addf %2, %4 : vector<128x384xf32>
    %6 = vector.extract_strided_slice %5 {offsets = [0, 0], sizes = [128, 128], strides = [1, 1]} : vector<128x384xf32> to vector<128x128xf32>
    %cst_5 = arith.constant 0.000000e+00 : f32
    %7 = vector.broadcast %cst_5 : f32 to vector<128x128xf32>
    %8 = arith.maximumf %6, %7 : vector<128x128xf32>
    %9 = vector.extract_strided_slice %5 {offsets = [0, 128], sizes = [128, 128], strides = [1, 1]} : vector<128x384xf32> to vector<128x128xf32>
    %cst_6 = arith.constant 0.000000e+00 : f32
    %10 = vector.broadcast %cst_6 : f32 to vector<128x128xf32>
    %11 = arith.maximumf %9, %10 : vector<128x128xf32>
    %12 = vector.extract_strided_slice %5 {offsets = [0, 256], sizes = [128, 24], strides = [1, 1]} : vector<128x384xf32> to vector<128x24xf32>
    %13 = arith.truncf %8 : vector<128x128xf32> to vector<128x128xbf16>
    %c0_7 = arith.constant 0 : index
    %c0_8 = arith.constant 0 : index
    %14 = vector.load %arg4[%c0_7, %c0_8] : memref<128x32xbf16, #tpu.memory_space<vmem>>, vector<128x32xbf16>
    %cst_9 = arith.constant dense<0.000000e+00> : vector<128x32xf32>
    %15 = tpu.matmul %13, %14, %cst_9 {dimension_numbers = #tpu.dot_dimension_numbers<[1], [0], [0], [1], [0, 0, 1, 1], [], []>} : vector<128x128xbf16>, vector<128x32xbf16>, vector<128x32xf32> -> vector<128x32xf32>
    %c0_10 = arith.constant 0 : index
    %c0_11 = arith.constant 0 : index
    %16 = vector.load %arg5[%c0_10, %c0_11] : memref<1x32xf32, #tpu.memory_space<vmem>>, vector<1x32xf32>
    %17 = vector.broadcast %16 : vector<1x32xf32> to vector<128x32xf32>
    %18 = arith.addf %15, %17 : vector<128x32xf32>
    %cst_12 = arith.constant 0.000000e+00 : f32
    %19 = vector.broadcast %cst_12 : f32 to vector<128x32xf32>
    %20 = arith.maximumf %18, %19 : vector<128x32xf32>
    %21 = arith.truncf %11 : vector<128x128xf32> to vector<128x128xbf16>
    %c0_13 = arith.constant 0 : index
    %c0_14 = arith.constant 0 : index
    %22 = vector.load %arg6[%c0_13, %c0_14] : memref<128x32xbf16, #tpu.memory_space<vmem>>, vector<128x32xbf16>
    %cst_15 = arith.constant dense<0.000000e+00> : vector<128x32xf32>
    %23 = tpu.matmul %21, %22, %cst_15 {dimension_numbers = #tpu.dot_dimension_numbers<[1], [0], [0], [1], [0, 0, 1, 1], [], []>} : vector<128x128xbf16>, vector<128x32xbf16>, vector<128x32xf32> -> vector<128x32xf32>
    %c0_16 = arith.constant 0 : index
    %c0_17 = arith.constant 0 : index
    %24 = vector.load %arg7[%c0_16, %c0_17] : memref<1x32xf32, #tpu.memory_space<vmem>>, vector<1x32xf32>
    %25 = vector.broadcast %24 : vector<1x32xf32> to vector<128x32xf32>
    %26 = arith.addf %23, %25 : vector<128x32xf32>
    %cst_18 = arith.constant 0.000000e+00 : f32
    %27 = vector.broadcast %cst_18 : f32 to vector<128x32xf32>
    %28 = arith.maximumf %26, %27 : vector<128x32xf32>
    %29 = arith.truncf %20 : vector<128x32xf32> to vector<128x32xbf16>
    %c0_19 = arith.constant 0 : index
    %c0_20 = arith.constant 0 : index
    %30 = vector.load %arg8[%c0_19, %c0_20] : memref<32x4xbf16, #tpu.memory_space<vmem>>, vector<32x4xbf16>
    %cst_21 = arith.constant dense<0.000000e+00> : vector<128x4xf32>
    %31 = tpu.matmul %29, %30, %cst_21 {dimension_numbers = #tpu.dot_dimension_numbers<[1], [0], [0], [1], [0, 0, 1, 1], [], []>} : vector<128x32xbf16>, vector<32x4xbf16>, vector<128x4xf32> -> vector<128x4xf32>
    %c0_22 = arith.constant 0 : index
    %c0_23 = arith.constant 0 : index
    %32 = vector.load %arg9[%c0_22, %c0_23] : memref<1x4xf32, #tpu.memory_space<vmem>>, vector<1x4xf32>
    %33 = vector.broadcast %32 : vector<1x4xf32> to vector<128x4xf32>
    %34 = arith.addf %31, %33 : vector<128x4xf32>
    %35 = arith.negf %34 : vector<128x4xf32>
    %36 = math.exp %35 : vector<128x4xf32>
    %cst_24 = arith.constant 1.000000e+00 : f32
    %37 = vector.broadcast %cst_24 : f32 to vector<128x4xf32>
    %38 = arith.addf %37, %36 : vector<128x4xf32>
    %39 = arith.divf %37, %38 : vector<128x4xf32>
    %40 = arith.truncf %28 : vector<128x32xf32> to vector<128x32xbf16>
    %c0_25 = arith.constant 0 : index
    %c0_26 = arith.constant 0 : index
    %41 = vector.load %arg10[%c0_25, %c0_26] : memref<32x4xbf16, #tpu.memory_space<vmem>>, vector<32x4xbf16>
    %cst_27 = arith.constant dense<0.000000e+00> : vector<128x4xf32>
    %42 = tpu.matmul %40, %41, %cst_27 {dimension_numbers = #tpu.dot_dimension_numbers<[1], [0], [0], [1], [0, 0, 1, 1], [], []>} : vector<128x32xbf16>, vector<32x4xbf16>, vector<128x4xf32> -> vector<128x4xf32>
    %c0_28 = arith.constant 0 : index
    %c0_29 = arith.constant 0 : index
    %43 = vector.load %arg11[%c0_28, %c0_29] : memref<1x4xf32, #tpu.memory_space<vmem>>, vector<1x4xf32>
    %44 = vector.broadcast %43 : vector<1x4xf32> to vector<128x4xf32>
    %45 = arith.addf %42, %44 : vector<128x4xf32>
    %46 = arith.negf %45 : vector<128x4xf32>
    %47 = math.exp %46 : vector<128x4xf32>
    %cst_30 = arith.constant 1.000000e+00 : f32
    %48 = vector.broadcast %cst_30 : f32 to vector<128x4xf32>
    %49 = arith.addf %48, %47 : vector<128x4xf32>
    %50 = arith.divf %48, %49 : vector<128x4xf32>
    %51 = tpu.concatenate %12, %39, %50 in 1 : vector<128x24xf32>, vector<128x4xf32>, vector<128x4xf32> -> vector<128x32xf32>
    %c0_31 = arith.constant 0 : index
    %c0_32 = arith.constant 0 : index
    %52 = vector.load %arg12[%c0_31, %c0_32] : memref<128x128xf32, #tpu.memory_space<vmem>>, vector<128x32xf32>
    tpu.vector_store %arg12[%c0_31, %c0_32], %51 {strides = array<i32>} : memref<128x128xf32, #tpu.memory_space<vmem>>, vector<128x32xf32>,
    return
  }
  func.func @transform_0(%arg0: i32) -> (i32, i32) {
    %c0_i32 = arith.constant 0 : i32
    %c0_i32_0 = arith.constant 0 : i32
    return %arg0, %c0_i32 : i32, i32
  }
  func.func @transform_1(%arg0: i32) -> (i32, i32) {
    %c0_i32 = arith.constant 0 : i32
    %c0_i32_0 = arith.constant 0 : i32
    %c0_i32_1 = arith.constant 0 : i32
    return %c0_i32, %c0_i32_0 : i32, i32
  }
  func.func @transform_2(%arg0: i32) -> (i32, i32) {
    %c0_i32 = arith.constant 0 : i32
    %c0_i32_0 = arith.constant 0 : i32
    %c0_i32_1 = arith.constant 0 : i32
    return %c0_i32, %c0_i32_0 : i32, i32
  }
  func.func @transform_3(%arg0: i32) -> (i32, i32) {
    %c0_i32 = arith.constant 0 : i32
    %c0_i32_0 = arith.constant 0 : i32
    %c0_i32_1 = arith.constant 0 : i32
    return %c0_i32, %c0_i32_0 : i32, i32
  }
  func.func @transform_4(%arg0: i32) -> (i32, i32) {
    %c0_i32 = arith.constant 0 : i32
    %c0_i32_0 = arith.constant 0 : i32
    %c0_i32_1 = arith.constant 0 : i32
    return %c0_i32, %c0_i32_0 : i32, i32
  }
  func.func @transform_5(%arg0: i32) -> (i32, i32) {
    %c0_i32 = arith.constant 0 : i32
    %c0_i32_0 = arith.constant 0 : i32
    %c0_i32_1 = arith.constant 0 : i32
    return %c0_i32, %c0_i32_0 : i32, i32
  }
  func.func @transform_6(%arg0: i32) -> (i32, i32) {
    %c0_i32 = arith.constant 0 : i32
    %c0_i32_0 = arith.constant 0 : i32
    %c0_i32_1 = arith.constant 0 : i32
    return %c0_i32, %c0_i32_0 : i32, i32
  }
  func.func @transform_7(%arg0: i32) -> (i32, i32) {
    %c0_i32 = arith.constant 0 : i32
    %c0_i32_0 = arith.constant 0 : i32
    %c0_i32_1 = arith.constant 0 : i32
    return %c0_i32, %c0_i32_0 : i32, i32
  }
  func.func @transform_8(%arg0: i32) -> (i32, i32) {
    %c0_i32 = arith.constant 0 : i32
    %c0_i32_0 = arith.constant 0 : i32
    %c0_i32_1 = arith.constant 0 : i32
    return %c0_i32, %c0_i32_0 : i32, i32
  }
  func.func @transform_9(%arg0: i32) -> (i32, i32) {
    %c0_i32 = arith.constant 0 : i32
    %c0_i32_0 = arith.constant 0 : i32
    %c0_i32_1 = arith.constant 0 : i32
    return %c0_i32, %c0_i32_0 : i32, i32
  }
  func.func @transform_10(%arg0: i32) -> (i32, i32) {
    %c0_i32 = arith.constant 0 : i32
    %c0_i32_0 = arith.constant 0 : i32
    %c0_i32_1 = arith.constant 0 : i32
    return %c0_i32, %c0_i32_0 : i32, i32
  }
  func.func @transform_11(%arg0: i32) -> (i32, i32) {
    %c0_i32 = arith.constant 0 : i32
    %c0_i32_0 = arith.constant 0 : i32
    return %arg0, %c0_i32 : i32, i32
  }
}

</mosaic_0001>

<bundles_post_ra>
// kernel: vrdformer_forward.1
= control target key start
LH: loop header
LB: loop body
LE: loop exit
PB: predicated region body
PF: predicated region fallthrough
CT: control target
= control target key end

     0   :  { %v1940_v1 = vmov 0   ;;  %vm152_vm0 = vcmask 261120   ;;  %v65_v33 = vlaneseq  ;;  %vm1427_vm1 = vcmask 195584   ;;  %s2501_s1 = inlined_call_operand.vmem [shape: bf16[32,384], index: 1, kind: input, shape index: {}]   ;;  %s2502_s0 = inlined_call_operand.vmem [shape: bf16[128,32], index: 0, kind: input, shape index: {}]   ;;  %s2503_s5 = inlined_call_operand.vmem [shape: bf16[128,32], index: 5, kind: input, shape index: {}]   ;;  %s2504_s3 = inlined_call_operand.vmem [shape: bf16[128,32], index: 3, kind: input, shape index: {}]   ;;  %s2505_s7 = inlined_call_operand.vmem [shape: bf16[32,4], index: 7, kind: input, shape index: {}]   ;;  %s2506_s9 = inlined_call_operand.vmem [shape: bf16[32,4], index: 9, kind: input, shape index: {}]   ;;  %s2507_s2 = inlined_call_operand.vmem [shape: f32[1,384], index: 2, kind: input, shape index: {}]   ;;  %s2508_s4 = inlined_call_operand.vmem [shape: f32[1,32], index: 4, kind: input, shape index: {}]   ;;  %s2509_s6 = inlined_call_operand.vmem [shape: f32[1,32], index: 6, kind: input, shape index: {}]   ;;  %s2510_s8 = inlined_call_operand.vmem [shape: f32[1,4], index: 8, kind: input, shape index: {}]   ;;  %s2511_s10 = inlined_call_operand.vmem [shape: f32[1,4], index: 10, kind: input, shape index: {}]   ;;  %s2512_s11 = inlined_call_operand.vmem [shape: f32[128,128], index: 11, kind: output, shape index: {}]  }
   0x1   :  { %v1776_v0 = vld [vmem:[%s2501_s1 + $0x4] ss:$12 sps:$4 sm:$0xff]   ;;  %209 = vmatprep.mubr.bf16.mxu0 %v1940_v1  ;;  %269 = vmatprep.mubr.bf16.mxu1 %v1940_v1  ;;  %v1778_v2 = vld [vmem:[%s2501_s1] ss:$12 sps:$4 sm:$0xff]   ;;  %v1779_v3 = vld [vmem:[%s2501_s1 + $0x1c] ss:$12 sps:$4 sm:$0xff]  }
   0x2   :  { %177 = vmatprep.subr.bf16.mxu0 %v1776_v0  ;;  %1769 = vmatprep.subr.bf16.mxu1 %v1776_v0  ;;  %v1781_v4 = vld [vmem:[%s2501_s1 + $0x18] ss:$12 sps:$4 sm:$0xff]   ;;  %v1788_v6 = vld [vmem:[%s2502_s0 + $0x30] sm:$0xff]   ;;  %v1783_v8 = vld [vmem:[%s2502_s0 + $0x8] sm:$0xff]   ;;  %v2129_v34 = vshrl.u32 %v65_v33, 7  ;;  %vm1444_vm2 = vcmask 228352  }
   0x3   :  { %178 = vmatpush1.bf16.msra.mxu0 %v1778_v2  ;;  %1771 = vmatpush1.bf16.msra.mxu1 %v1778_v2  ;;  %v1782_v5 = vld [vmem:[%s2502_s0] sm:$0xff]   ;;  %v1790_v7 = vld [vmem:[%s2501_s1 + $0x8] ss:$12 sps:$4 sm:$0xff]   ;;  %v1789_v12 = vld [vmem:[%s2502_s0 + $0x38] sm:$0xff]  }
   0x4   :  { %179 = vmatprep.subr.bf16.mxu0 %v1779_v3  ;;  %1770 = vmatprep.subr.bf16.mxu1 %v1779_v3  ;;  %v1791_v9 = vld [vmem:[%s2503_s5] sm:$0xff]   ;;  %v1793_v11 = vld [vmem:[%s2503_s5 + $0x8] sm:$0xff]   ;;  %v1795_v14 = vld [vmem:[%s2503_s5 + $0x10] sm:$0xff]   ;;  %v67_v35 = vsub.s32 0, %v2129_v34  ;;  %v71_v37 = vsub.s32 1, %v2129_v34 }
   0x5   :  { %v1792_v10 = vld [vmem:[%s2501_s1 + $0x20] ss:$12 sps:$4 sm:$0xff]   ;;  %v1784_v15 = vld [vmem:[%s2502_s0 + $0x10] sm:$0xff]   ;;  %v1797_v16 = vld [vmem:[%s2503_s5 + $0x18] sm:$0xff]  }
   0x6   :  { %v1794_v13 = vld [vmem:[%s2504_s3] sm:$0xff]   ;;  %v1796_v17 = vld [vmem:[%s2504_s3 + $0x8] sm:$0xff]   ;;  %v1798_v19 = vld [vmem:[%s2504_s3 + $0x10] sm:$0xff]  }
   0x7   :  { %180 = vmatpush1.bf16.msra.mxu0 %v1781_v4  ;;  %1772 = vmatpush1.bf16.msra.mxu1 %v1781_v4  ;;  %v1800_v18 = vld [vmem:[%s2503_s5 + $0x20] sm:$0xff]   ;;  %v1785_v20 = vld [vmem:[%s2502_s0 + $0x18] sm:$0xff]   ;;  %v1787_v23 = vld [vmem:[%s2502_s0 + $0x28] sm:$0xff]  }
   0x8   :  { %1645 = vmatprep.subr.bf16.mxu1 %v1790_v7  ;;  %1697 = vmatprep.subr.bf16.mxu0 %v1791_v9  ;;  %v1799_v21 = vld [vmem:[%s2504_s3 + $0x18] sm:$0xff]   ;;  %v1786_v22 = vld [vmem:[%s2502_s0 + $0x20] sm:$0xff]   ;;  %v1803_v25 = vld [vmem:[%s2504_s3 + $0x28] sm:$0xff]  }
   0x9   :  { %v1801_v24 = vld [vmem:[%s2504_s3 + $0x20] sm:$0xff]   ;;  %v1802_v26 = vld [vmem:[%s2503_s5 + $0x28] sm:$0xff]   ;;  %v1804_v27 = vld [vmem:[%s2504_s3 + $0x30] sm:$0xff]  }
   0xa   :  { %1495 = vmatmul.mubr.msk.bf16.vlgmr.msra.gmra.mrb[0].mxu0 %vm152_vm0, %v1782_v5  ;;  %1501 = vmatmul.mubr.msk.bf16.vlgmr.msra.gmra.mrb[0].mxu1 %vm152_vm0, %v1788_v6  ;;  %v1805_v28 = vld [vmem:[%s2503_s5 + $0x30] sm:$0xff]   ;;  %v1806_v29 = vld [vmem:[%s2504_s3 + $0x38] sm:$0xff]   ;;  %v2120_v31 = vld [vmem:[%s2505_s7] sm:$0xff]  }
   0xb   :  { %219 = vmatprep.mubr.bf16.mxu0 %v1940_v1  ;;  %279 = vmatprep.mubr.bf16.mxu1 %v1940_v1  ;;  %v1807_v30 = vld [vmem:[%s2503_s5 + $0x38] sm:$0xff]   ;;  %v2125_v32 = vld [vmem:[%s2506_s9] sm:$0xff]  }
   0xc   :  { %1646 = vmatpush3.bf16.msra.mxu1 %v1790_v7  ;;  %1698 = vmatpush3.bf16.msra.mxu0 %v1791_v9  ;;  %v2135_v36 = vld [vmem:[%s2507_s2] sm:$0x7] }
   0xd   :  { %1647 = vmatprep.subr.bf16.mxu1 %v1792_v10  ;;  %1699 = vmatprep.subr.bf16.mxu0 %v1793_v11  ;;  %v2139_v38 = vrot.slane %v2135_v36, %v67_v35  ;;  %v2142_v39 = vrot.slane %v2135_v36, %v71_v37 }
  0x10   :  { %1648 = vmatpush3.bf16.msra.mxu1 %v1792_v10  ;;  %1700 = vmatpush3.bf16.msra.mxu0 %v1793_v11 }
  0x11   :  { %1665 = vmatprep.subr.bf16.mxu1 %v1794_v13  ;;  %1701 = vmatprep.subr.bf16.mxu0 %v1795_v14 }
  0x12   :  { %1496 = vmatmul.mubr.msk.bf16.gmra.mrb[4].mxu0 %vm152_vm0, %v1783_v8  ;;  %1502 = vmatmul.mubr.msk.bf16.gmra.mrb[4].mxu1 %vm152_vm0, %v1789_v12 }
  0x13   :  { %229 = vmatprep.mubr.bf16.mxu0 %v1940_v1  ;;  %1649 = vmatprep.mubr.msk.bf16.mxu1 %vm152_vm0, %v1782_v5 }
  0x14   :  { %1702 = vmatpush3.bf16.msra.mxu0 %v1795_v14 }
  0x15   :  { %1703 = vmatprep.subr.bf16.mxu0 %v1797_v16 }
  0x18   :  { %1704 = vmatpush3.bf16.msra.mxu0 %v1797_v16 }
  0x19   :  { %1705 = vmatprep.subr.bf16.mxu0 %v1800_v18 }
  0x1a   :  { %1497 = vmatmul.mubr.msk.bf16.gmra.mrb[8].mxu0 %vm152_vm0, %v1784_v15  ;;  %1650 = vmatmul.mubr.msk.bf16.vlgmr.msra.gmra.mrb[8].mxu1 %vm152_vm0, %v1783_v8 }
  0x1b   :  { %239 = vmatprep.mubr.bf16.mxu0 %v1940_v1  ;;  %1666 = vmatpush3.bf16.msra.mxu1 %v1794_v13 }
  0x1c   :  { %1653 = vmatprep.mubr.msk.bf16.mxu1 %vm152_vm0, %v1784_v15  ;;  %1667 = vmatprep.subr.bf16.mxu1 %v1796_v17 }
  0x1d   :  { %1706 = vmatpush3.bf16.msra.mxu0 %v1800_v18 }
  0x1e   :  { %1707 = vmatprep.subr.bf16.mxu0 %v1802_v26 }
  0x1f   :  { %1668 = vmatpush3.bf16.msra.mxu1 %v1796_v17 }
  0x20   :  { %1669 = vmatprep.subr.bf16.mxu1 %v1798_v19 }
  0x21   :  { %1708 = vmatpush3.bf16.msra.mxu0 %v1802_v26 }
  0x22   :  { %1498 = vmatmul.mubr.msk.bf16.gmra.mrb[12].mxu0 %vm152_vm0, %v1785_v20  ;;  %1654 = vmatmul.mubr.msk.bf16.gmra.mrb[12].mxu1 %vm152_vm0, %v1785_v20 }
  0x23   :  { %249 = vmatprep.mubr.bf16.mxu0 %v1940_v1  ;;  %1670 = vmatpush3.bf16.msra.mxu1 %v1798_v19 }
  0x24   :  { %1657 = vmatprep.mubr.msk.bf16.mxu1 %vm152_vm0, %v1786_v22  ;;  %1671 = vmatprep.subr.bf16.mxu1 %v1799_v21 }
  0x25   :  { %1709 = vmatprep.subr.bf16.mxu0 %v1805_v28 }
  0x26   :  { %1710 = vmatpush3.bf16.msra.mxu0 %v1805_v28 }
  0x27   :  { %1672 = vmatpush3.bf16.msra.mxu1 %v1799_v21  ;;  %1711 = vmatprep.subr.bf16.mxu0 %v1807_v30 }
  0x28   :  { %1673 = vmatprep.subr.bf16.mxu1 %v1801_v24 }
  0x2a   :  { %1499 = vmatmul.mubr.msk.bf16.gmra.mrb[16].mxu0 %vm152_vm0, %v1786_v22  ;;  %1658 = vmatmul.mubr.msk.bf16.gmra.mrb[16].mxu1 %vm152_vm0, %v1787_v23 }
  0x2b   :  { %259 = vmatprep.mubr.bf16.mxu0 %v1940_v1  ;;  %1661 = vmatprep.mubr.msk.bf16.mxu1 %vm152_vm0, %v1788_v6 }
  0x2c   :  { %1674 = vmatpush3.bf16.msra.mxu1 %v1801_v24  ;;  %1712 = vmatpush3.bf16.msra.mxu0 %v1807_v30 }
  0x2d   :  { %1675 = vmatprep.subr.bf16.mxu1 %v1803_v25  ;;  %1749 = vmatprep.subr.bf16.mxu0 %v2125_v32 }
  0x30   :  { %1676 = vmatpush3.bf16.msra.mxu1 %v1803_v25 }
  0x31   :  { %1677 = vmatprep.subr.bf16.mxu1 %v1804_v27 }
  0x32   :  { %1500 = vmatmul.mubr.msk.bf16.gmra.mrb[20].mxu0 %vm152_vm0, %v1787_v23  ;;  %1662 = vmatmul.mubr.msk.bf16.gmra.mrb[20].mxu1 %vm152_vm0, %v1789_v12 }
  0x34   :  { %1678 = vmatpush3.bf16.msra.mxu1 %v1804_v27 }
  0x35   :  { %1679 = vmatprep.subr.bf16.mxu1 %v1806_v29 }
  0x38   :  { %1680 = vmatpush3.bf16.msra.mxu1 %v1806_v29  ;;  %v1810_v29 = vld [vmem:[%s2505_s7 + $0x8] sm:$0xff]  }
  0x39   :  { %1729 = vmatprep.subr.bf16.mxu1 %v2120_v31 }
  0xdd   :  { %v211_v40 = vpop.f32.mrb[0].mxu0  ;;  %v271_v43 = vpop.f32.mrb[0].mxu1 }
  0xde   :  { %v212_v41 = vadd.f32 %v211_v40, %v2139_v38  ;;  %v213_v42 = vpop.f32.mrb[1].mxu0  ;;  %v272_v46 = vadd.f32 %v271_v43, %v2139_v38  ;;  %v273_v47 = vpop.f32.mrb[1].mxu1 }
  0xdf   :  { %v214_v44 = vadd.f32 %v213_v42, %v2142_v39  ;;  %v215_v45 = vpop.f32.mrb[2].mxu0  ;;  %v274_v50 = vadd.f32 %v273_v47, %v2142_v39  ;;  %v275_v51 = vpop.f32.mrb[2].mxu1 }
  0xe0   :  { %v216_v48 = vadd.f32 %v215_v45, %v2139_v38  ;;  %v217_v49 = vpop.f32.mrb[3].mxu0  ;;  %v399_v53 = vmax.f32 %v272_v46, 0.0  ;;  %v276_v54 = vadd.f32 %v275_v51, %v2139_v38  ;;  %v277_v55 = vpop.f32.mrb[3].mxu1  ;;  %v387_v56 = vmax.f32 %v212_v41, 0.0 }
  0xe1   :  { %v218_v52 = vadd.f32 %v217_v49, %v2142_v39  ;;  %v415_v58 = vmax.f32 %v274_v50, 0.0  ;;  %v278_v59 = vadd.f32 %v277_v55, %v2142_v39  ;;  %v403_v60 = vmax.f32 %v214_v44, 0.0 }
  0xe2   :  { %v388_v57 = vmax.f32 %v216_v48, 0.0  ;;  %v400_v62 = vmax.f32 %v276_v54, 0.0 }
  0xe3   :  { %v404_v61 = vmax.f32 %v218_v52, 0.0  ;;  %v416_v0 = vmax.f32 %v278_v59, 0.0 }
  0xe4   :  { %v419_v63 = vpack.c.bf16 %v388_v57, %v387_v56  ;;  %v2152_v3 = vpack.c.bf16 %v400_v62, %v399_v53 }
  0xe5   :  { %v611_v1 = vpack.c.bf16 %v404_v61, %v403_v60  ;;  %v221_v2 = vpop.f32.mrb[4].mxu0  ;;  %v2155_v6 = vpack.c.bf16 %v416_v0, %v415_v58  ;;  %v281_v7 = vpop.f32.mrb[4].mxu1 }
  0xe6   :  { %v222_v4 = vadd.f32 %v221_v2, %v2139_v38  ;;  %v223_v5 = vpop.f32.mrb[5].mxu0  ;;  %1681 = vmatprep.mubr.bf16.mxu1 %v419_v63  ;;  %v282_v10 = vadd.f32 %v281_v7, %v2139_v38  ;;  %v283_v11 = vpop.f32.mrb[5].mxu1 }
  0xe7   :  { %v224_v8 = vadd.f32 %v223_v5, %v2142_v39  ;;  %v225_v9 = vpop.f32.mrb[6].mxu0  ;;  %1713 = vmatprep.mubr.bf16.mxu0 %v611_v1  ;;  %v284_v14 = vadd.f32 %v283_v11, %v2142_v39  ;;  %v285_v15 = vpop.f32.mrb[6].mxu1 }
  0xe8   :  { %v226_v12 = vadd.f32 %v225_v9, %v2139_v38  ;;  %v227_v13 = vpop.f32.mrb[7].mxu0  ;;  %v401_v17 = vmax.f32 %v282_v10, 0.0  ;;  %v286_v18 = vadd.f32 %v285_v15, %v2139_v38  ;;  %v287_v19 = vpop.f32.mrb[7].mxu1  ;;  %v389_v20 = vmax.f32 %v222_v4, 0.0 }
  0xe9   :  { %v228_v16 = vadd.f32 %v227_v13, %v2142_v39  ;;  %v417_v22 = vmax.f32 %v284_v14, 0.0  ;;  %v288_v23 = vadd.f32 %v287_v19, %v2142_v39  ;;  %v405_v24 = vmax.f32 %v224_v8, 0.0 }
  0xea   :  { %v390_v21 = vmax.f32 %v226_v12, 0.0  ;;  %v402_v26 = vmax.f32 %v286_v18, 0.0 }
  0xeb   :  { %v406_v25 = vmax.f32 %v228_v16, 0.0  ;;  %v418_v28 = vmax.f32 %v288_v23, 0.0 }
  0xec   :  { %v420_v27 = vpack.c.bf16 %v390_v21, %v389_v20  ;;  %v2167_v35 = vpack.c.bf16 %v402_v26, %v401_v17 }
  0xed   :  { %v612_v30 = vpack.c.bf16 %v406_v25, %v405_v24  ;;  %v231_v33 = vpop.f32.mrb[8].mxu0  ;;  %v2170_v41 = vpack.c.bf16 %v418_v28, %v417_v22  ;;  %v2172_v42 = vpop.f32.mrb[8].mxu1 }
  0xee   :  { %v232_v37 = vadd.f32 %v231_v33, %v2139_v38  ;;  %v233_v40 = vpop.f32.mrb[9].mxu0  ;;  %1682 = vmatmul.mubr.bf16.vlgmr.msra.gmra.mrb[24].mxu1 %v420_v27  ;;  %v2175_v45 = vpop.f32.mrb[9].mxu1  ;;  %v75_v27 = vsub.s32 2, %v2129_v34 }
  0xef   :  { %v234_v43 = vadd.f32 %v233_v40, %v2142_v39  ;;  %v235_v44 = vpop.f32.mrb[10].mxu0  ;;  %1714 = vmatmul.mubr.bf16.vlgmr.msra.gmra.mrb[24].mxu0 %v612_v30  ;;  %1730 = vmatpush3.bf16.msra.mxu1 %v2120_v31  ;;  %v2179_v48 = vpop.f32.mrb[10].mxu1 }
  0xf0   :  { %v236_v46 = vadd.f32 %v235_v44, %v2139_v38  ;;  %v237_v47 = vpop.f32.mrb[11].mxu0  ;;  %1750 = vmatpush3.bf16.msra.mxu0 %v2125_v32  ;;  %1731 = vmatprep.subr.bf16.mxu1 %v1810_v29  ;;  %v2183_v50 = vpop.f32.mrb[11].mxu1  ;;  %v391_v51 = vmax.f32 %v232_v37, 0.0 }
  0xf1   :  { %v238_v49 = vadd.f32 %v237_v47, %v2142_v39  ;;  %v407_v53 = vmax.f32 %v234_v43, 0.0 }
  0xf2   :  { %v392_v52 = vmax.f32 %v236_v46, 0.0  ;;  %v2215_v46 = vrot.slane %v2135_v36, %v75_v27 }
  0xf3   :  { %v408_v54 = vmax.f32 %v238_v49, 0.0  ;;  %1732 = vmatpush3.bf16.msra.mxu1 %v1810_v29 }
  0xf4   :  { %v421_v55 = vpack.c.bf16 %v392_v52, %v391_v51 }
  0xf5   :  { %v613_v56 = vpack.c.bf16 %v408_v54, %v407_v53  ;;  %v241_v31 = vpop.f32.mrb[12].mxu0  ;;  %v2186_v59 = vpop.f32.mrb[12].mxu1 }
  0xf6   :  { %v242_v57 = vadd.f32 %v241_v31, %v2139_v38  ;;  %v243_v58 = vpop.f32.mrb[13].mxu0  ;;  %1685 = vmatprep.mubr.bf16.mxu1 %v421_v55  ;;  %v2189_v61 = vpop.f32.mrb[13].mxu1 }
  0xf7   :  { %v244_v32 = vadd.f32 %v243_v58, %v2142_v39  ;;  %v245_v60 = vpop.f32.mrb[14].mxu0  ;;  %1717 = vmatprep.mubr.bf16.mxu0 %v613_v56  ;;  %v2192_v0 = vpop.f32.mrb[14].mxu1 }
  0xf8   :  { %v246_v62 = vadd.f32 %v245_v60, %v2139_v38  ;;  %v247_v63 = vpop.f32.mrb[15].mxu0  ;;  %v2195_v2 = vpop.f32.mrb[15].mxu1  ;;  %v393_v4 = vmax.f32 %v242_v57, 0.0 }
  0xf9   :  { %v248_v1 = vadd.f32 %v247_v63, %v2142_v39  ;;  %v409_v7 = vmax.f32 %v244_v32, 0.0 }
  0xfa   :  { %v394_v5 = vmax.f32 %v246_v62, 0.0 }
  0xfb   :  { %v410_v8 = vmax.f32 %v248_v1, 0.0 }
  0xfc   :  { %v422_v9 = vpack.c.bf16 %v394_v5, %v393_v4 }
  0xfd   :  { %v614_v10 = vpack.c.bf16 %v410_v8, %v409_v7  ;;  %v251_v11 = vpop.f32.mrb[16].mxu0  ;;  %v2198_v14 = vpop.f32.mrb[16].mxu1 }
  0xfe   :  { %v252_v12 = vadd.f32 %v251_v11, %v2139_v38  ;;  %v253_v13 = vpop.f32.mrb[17].mxu0  ;;  %1686 = vmatmul.mubr.bf16.gmra.mrb[28].mxu1 %v422_v9  ;;  %v2201_v17 = vpop.f32.mrb[17].mxu1 }
  0xff   :  { %v254_v15 = vadd.f32 %v253_v13, %v2142_v39  ;;  %v255_v16 = vpop.f32.mrb[18].mxu0  ;;  %1718 = vmatmul.mubr.bf16.gmra.mrb[28].mxu0 %v614_v10  ;;  %v2204_v20 = vpop.f32.mrb[18].mxu1 }
 0x100   :  { %v256_v18 = vadd.f32 %v255_v16, %v2139_v38  ;;  %v257_v19 = vpop.f32.mrb[19].mxu0  ;;  %v2207_v22 = vpop.f32.mrb[19].mxu1  ;;  %v395_v23 = vmax.f32 %v252_v12, 0.0 }
 0x101   :  { %v258_v21 = vadd.f32 %v257_v19, %v2142_v39  ;;  %v411_v25 = vmax.f32 %v254_v15, 0.0 }
 0x102   :  { %v396_v24 = vmax.f32 %v256_v18, 0.0 }
 0x103   :  { %v412_v26 = vmax.f32 %v258_v21, 0.0 }
 0x104   :  { %v423_v28 = vpack.c.bf16 %v396_v24, %v395_v23 }
 0x105   :  { %v615_v29 = vpack.c.bf16 %v412_v26, %v411_v25  ;;  %v261_v30 = vpop.f32.mrb[20].mxu0  ;;  %v2211_v40 = vpop.f32.mrb[20].mxu1 }
 0x106   :  { %v262_v33 = vadd.f32 %v261_v30, %v2139_v38  ;;  %v263_v37 = vpop.f32.mrb[21].mxu0  ;;  %1689 = vmatprep.mubr.bf16.mxu1 %v423_v28  ;;  %v2217_v47 = vpop.f32.mrb[21].mxu1 }
 0x107   :  { %v264_v43 = vadd.f32 %v263_v37, %v2142_v39  ;;  %v265_v44 = vpop.f32.mrb[22].mxu0  ;;  %1721 = vmatprep.mubr.bf16.mxu0 %v615_v29  ;;  %v1664_v51 = vpop.f32.mrb[22].mxu1 }
 0x108   :  { %v266_v34 = vadd.f32 %v265_v44, %v2139_v38  ;;  %v267_v49 = vpop.f32.mrb[23].mxu0  ;;  %v2222_v53 = vadd.f32 %v1664_v51, %v2215_v46  ;;  %v375_v54 = vpop.f32.mrb[23].mxu1  ;;  %v397_v55 = vmax.f32 %v262_v33, 0.0  ;;  %v1811_v38 = vld [vmem:[%s2506_s9 + $0x8] sm:$0xff]  }
 0x109   :  { %v268_v52 = vadd.f32 %v267_v49, %v2142_v39  ;;  %v2225_v31 = vadd.f32 %v375_v54, %v2215_v46  ;;  %v413_v57 = vmax.f32 %v264_v43, 0.0  ;;  %1751 = vmatprep.subr.bf16.mxu0 %v1811_v38  ;;  %v2237_v39 = vld [vmem:[%s2508_s4] ss:$0 sm:$0xff] }
 0x10a   :  { %v398_v56 = vmax.f32 %v266_v34, 0.0  ;;  %1752 = vmatpush3.bf16.msra.mxu0 %v1811_v38 }
 0x10b   :  { %v414_v36 = vmax.f32 %v268_v52, 0.0 }
 0x10c   :  { %v424_v58 = vpack.c.bf16 %v398_v56, %v397_v55 }
 0x10d   :  { %v616_v32 = vpack.c.bf16 %v414_v36, %v413_v57 }
 0x10e   :  { %1690 = vmatmul.mubr.bf16.gmra.mrb[32].mxu1 %v424_v58 }
 0x10f   :  { %1722 = vmatmul.mubr.bf16.gmra.mrb[32].mxu0 %v616_v32  ;;  %1693 = vmatprep.mubr.bf16.mxu1 %v2152_v3  ;;  %v2242_v3 = vld [vmem:[%s2509_s6] ss:$0 sm:$0xff] }
 0x110   :  { %1725 = vmatprep.mubr.bf16.mxu0 %v2155_v6 }
 0x116   :  { %1694 = vmatmul.mubr.bf16.gmra.mrb[36].mxu1 %v2167_v35 }
 0x117   :  { %1726 = vmatmul.mubr.bf16.gmra.mrb[36].mxu0 %v2170_v41 }
 0x1c1   :  { %v1683_v6 = vpop.f32.mrb[24].mxu1 }
 0x1c2   :  { %v541_v35 = vadd.f32 %v1683_v6, %v2237_v39  ;;  %v532_v41 = vpop.f32.mrb[25].mxu1  ;;  %v1715_v60 = vpop.f32.mrb[24].mxu0 }
 0x1c3   :  { %v533_v62 = vadd.f32 %v2237_v39, %v532_v41  ;;  %v733_v63 = vadd.f32 %v1715_v60, %v2242_v3  ;;  %v1684_v1 = vpop.f32.mrb[26].mxu1  ;;  %v724_v4 = vpop.f32.mrb[25].mxu0 }
 0x1c4   :  { %v544_v5 = vadd.f32 %v1684_v1, %v2237_v39  ;;  %v725_v7 = vadd.f32 %v2242_v3, %v724_v4  ;;  %v535_v8 = vpop.f32.mrb[27].mxu1  ;;  %v1716_v9 = vpop.f32.mrb[26].mxu0  ;;  %v597_v13 = vmax.f32 %v541_v35, 0.0 }
 0x1c5   :  { %v536_v10 = vadd.f32 %v2237_v39, %v535_v8  ;;  %v736_v11 = vadd.f32 %v1716_v9, %v2242_v3  ;;  %v727_v12 = vpop.f32.mrb[27].mxu0  ;;  %v595_v18 = vmax.f32 %v533_v62, 0.0  ;;  %v789_v19 = vmax.f32 %v733_v63, 0.0 }
 0x1c6   :  { %v598_v15 = vmax.f32 %v544_v5, 0.0  ;;  %v728_v16 = vadd.f32 %v2242_v3, %v727_v12  ;;  %v787_v25 = vmax.f32 %v725_v7, 0.0 }
 0x1c7   :  { %v596_v21 = vmax.f32 %v536_v10, 0.0  ;;  %v790_v23 = vmax.f32 %v736_v11, 0.0 }
 0x1c8   :  { %v804_v24 = vpack.c.bf16 %v598_v15, %v597_v13  ;;  %v788_v26 = vmax.f32 %v728_v16, 0.0 }
 0x1c9   :  { %v803_v27 = vpack.c.bf16 %v596_v21, %v595_v18  ;;  %v1052_v28 = vpack.c.bf16 %v790_v23, %v789_v19 }
 0x1ca   :  { %v1051_v29 = vpack.c.bf16 %v788_v26, %v787_v25 }
 0x1cb   :  { %1733 = vmatprep.mubr.msk.bf16.mxu1 %vm152_vm0, %v803_v27 }
 0x1cc   :  { %1734 = vmatmul.mubr.msk.bf16.vlgmr.msra.gmra.mrb[40].mxu1 %vm152_vm0, %v804_v24  ;;  %1753 = vmatprep.mubr.msk.bf16.mxu0 %vm152_vm0, %v1051_v29 }
 0x1cd   :  { %1754 = vmatmul.mubr.msk.bf16.vlgmr.msra.gmra.mrb[40].mxu0 %vm152_vm0, %v1052_v28 }
 0x1d1   :  { %v1687_v30 = vpop.f32.mrb[28].mxu1 }
 0x1d2   :  { %v557_v33 = vadd.f32 %v1687_v30, %v2237_v39  ;;  %v548_v37 = vpop.f32.mrb[29].mxu1  ;;  %v1719_v43 = vpop.f32.mrb[28].mxu0 }
 0x1d3   :  { %v549_v44 = vadd.f32 %v2237_v39, %v548_v37  ;;  %v749_v34 = vadd.f32 %v1719_v43, %v2242_v3  ;;  %v1688_v49 = vpop.f32.mrb[30].mxu1  ;;  %v740_v51 = vpop.f32.mrb[29].mxu0 }
 0x1d4   :  { %v560_v52 = vadd.f32 %v1688_v49, %v2237_v39  ;;  %v741_v54 = vadd.f32 %v2242_v3, %v740_v51  ;;  %v551_v55 = vpop.f32.mrb[31].mxu1  ;;  %v1720_v56 = vpop.f32.mrb[30].mxu0  ;;  %v601_v32 = vmax.f32 %v557_v33, 0.0 }
 0x1d5   :  { %v552_v57 = vadd.f32 %v2237_v39, %v551_v55  ;;  %v752_v36 = vadd.f32 %v1720_v56, %v2242_v3  ;;  %v743_v58 = vpop.f32.mrb[31].mxu0  ;;  %v599_v35 = vmax.f32 %v549_v44, 0.0  ;;  %v793_v41 = vmax.f32 %v749_v34, 0.0 }
 0x1d6   :  { %v602_v38 = vmax.f32 %v560_v52, 0.0  ;;  %v744_v6 = vadd.f32 %v2242_v3, %v743_v58  ;;  %v791_v1 = vmax.f32 %v741_v54, 0.0 }
 0x1d7   :  { %v600_v60 = vmax.f32 %v552_v57, 0.0  ;;  %v794_v62 = vmax.f32 %v752_v36, 0.0 }
 0x1d8   :  { %v806_v63 = vpack.c.bf16 %v602_v38, %v601_v32  ;;  %v792_v4 = vmax.f32 %v744_v6, 0.0 }
 0x1d9   :  { %v805_v5 = vpack.c.bf16 %v600_v60, %v599_v35  ;;  %v1054_v7 = vpack.c.bf16 %v794_v62, %v793_v41 }
 0x1da   :  { %v1053_v8 = vpack.c.bf16 %v792_v4, %v791_v1 }
 0x1db   :  { %1737 = vmatprep.mubr.msk.bf16.mxu1 %vm152_vm0, %v805_v5 }
 0x1dc   :  { %1738 = vmatmul.mubr.msk.bf16.gmra.mrb[44].mxu1 %vm152_vm0, %v806_v63  ;;  %1757 = vmatprep.mubr.msk.bf16.mxu0 %vm152_vm0, %v1053_v8 }
 0x1dd   :  { %1758 = vmatmul.mubr.msk.bf16.gmra.mrb[44].mxu0 %vm152_vm0, %v1054_v7 }
 0x1e1   :  { %v1691_v9 = vpop.f32.mrb[32].mxu1 }
 0x1e2   :  { %v573_v10 = vadd.f32 %v1691_v9, %v2237_v39  ;;  %v564_v11 = vpop.f32.mrb[33].mxu1  ;;  %v1723_v12 = vpop.f32.mrb[32].mxu0 }
 0x1e3   :  { %v565_v13 = vadd.f32 %v2237_v39, %v564_v11  ;;  %v765_v15 = vadd.f32 %v1723_v12, %v2242_v3  ;;  %v1692_v16 = vpop.f32.mrb[34].mxu1  ;;  %v756_v18 = vpop.f32.mrb[33].mxu0 }
 0x1e4   :  { %v576_v19 = vadd.f32 %v1692_v16, %v2237_v39  ;;  %v757_v21 = vadd.f32 %v2242_v3, %v756_v18  ;;  %v567_v23 = vpop.f32.mrb[35].mxu1  ;;  %v1724_v24 = vpop.f32.mrb[34].mxu0  ;;  %v605_v28 = vmax.f32 %v573_v10, 0.0 }
 0x1e5   :  { %v568_v25 = vadd.f32 %v2237_v39, %v567_v23  ;;  %v768_v26 = vadd.f32 %v1724_v24, %v2242_v3  ;;  %v759_v27 = vpop.f32.mrb[35].mxu0  ;;  %v603_v33 = vmax.f32 %v565_v13, 0.0  ;;  %v797_v37 = vmax.f32 %v765_v15, 0.0 }
 0x1e6   :  { %v606_v29 = vmax.f32 %v576_v19, 0.0  ;;  %v760_v30 = vadd.f32 %v2242_v3, %v759_v27  ;;  %v795_v49 = vmax.f32 %v757_v21, 0.0 }
 0x1e7   :  { %v604_v43 = vmax.f32 %v568_v25, 0.0  ;;  %v798_v44 = vmax.f32 %v768_v26, 0.0 }
 0x1e8   :  { %v808_v34 = vpack.c.bf16 %v606_v29, %v605_v28  ;;  %v796_v51 = vmax.f32 %v760_v30, 0.0 }
 0x1e9   :  { %v807_v52 = vpack.c.bf16 %v604_v43, %v603_v33  ;;  %v1056_v54 = vpack.c.bf16 %v798_v44, %v797_v37  ;;  %v1695_v55 = vpop.f32.mrb[36].mxu1 }
 0x1ea   :  { %v1055_v56 = vpack.c.bf16 %v796_v51, %v795_v49  ;;  %v589_v57 = vadd.f32 %v1695_v55, %v2237_v39  ;;  %v580_v36 = vpop.f32.mrb[37].mxu1  ;;  %v1727_v58 = vpop.f32.mrb[36].mxu0 }
 0x1eb   :  { %v581_v32 = vadd.f32 %v2237_v39, %v580_v36  ;;  %v781_v38 = vadd.f32 %v1727_v58, %v2242_v3  ;;  %v1696_v6 = vpop.f32.mrb[38].mxu1  ;;  %v772_v35 = vpop.f32.mrb[37].mxu0  ;;  %1741 = vmatprep.mubr.msk.bf16.mxu1 %vm152_vm0, %v807_v52 }
 0x1ec   :  { %v609_v41 = vmax.f32 %v589_v57, 0.0  ;;  %v592_v60 = vadd.f32 %v1696_v6, %v2237_v39  ;;  %v773_v62 = vadd.f32 %v2242_v3, %v772_v35  ;;  %v583_v63 = vpop.f32.mrb[39].mxu1  ;;  %v1728_v1 = vpop.f32.mrb[38].mxu0  ;;  %1742 = vmatmul.mubr.msk.bf16.gmra.mrb[48].mxu1 %vm152_vm0, %v808_v34  ;;  %1761 = vmatprep.mubr.msk.bf16.mxu0 %vm152_vm0, %v1055_v56 }
 0x1ed   :  { %v607_v4 = vmax.f32 %v581_v32, 0.0  ;;  %v801_v5 = vmax.f32 %v781_v38, 0.0  ;;  %v584_v7 = vadd.f32 %v2237_v39, %v583_v63  ;;  %v784_v8 = vadd.f32 %v1728_v1, %v2242_v3  ;;  %v775_v9 = vpop.f32.mrb[39].mxu0  ;;  %1762 = vmatmul.mubr.msk.bf16.gmra.mrb[48].mxu0 %vm152_vm0, %v1056_v54  ;;  %v2295_v39 = vld [vmem:[%s2510_s8] ss:$0 sm:$0xff]  ;;  %s1941_s8 = smov 24  }
 0x1ee   :  { %v610_v10 = vmax.f32 %v592_v60, 0.0  ;;  %v799_v11 = vmax.f32 %v773_v62, 0.0  ;;  %v776_v12 = vadd.f32 %v2242_v3, %v775_v9  ;;  %v2300_v3 = vld [vmem:[%s2511_s10] ss:$0 sm:$0xff]  ;;  %s1942_s10 = smov 28  }
 0x1ef   :  { %v608_v13 = vmax.f32 %v584_v7, 0.0  ;;  %v802_v15 = vmax.f32 %v784_v8, 0.0 }
 0x1f0   :  { %v810_v16 = vpack.c.bf16 %v610_v10, %v609_v41  ;;  %v800_v18 = vmax.f32 %v776_v12, 0.0 }
 0x1f1   :  { %v809_v19 = vpack.c.bf16 %v608_v13, %v607_v4  ;;  %v1058_v21 = vpack.c.bf16 %v802_v15, %v801_v5 }
 0x1f2   :  { %v1057_v23 = vpack.c.bf16 %v800_v18, %v799_v11 }
 0x1f3   :  { %1745 = vmatprep.mubr.msk.bf16.mxu1 %vm152_vm0, %v809_v19 }
 0x1f4   :  { %1746 = vmatmul.mubr.msk.bf16.gmra.mrb[52].mxu1 %vm152_vm0, %v810_v16  ;;  %1765 = vmatprep.mubr.msk.bf16.mxu0 %vm152_vm0, %v1057_v23 }
 0x1f5   :  { %1766 = vmatmul.mubr.msk.bf16.gmra.mrb[52].mxu0 %vm152_vm0, %v1058_v21 }
 0x29f   :  { %v1735_v24 = vpop.f32.mrb[40].mxu1 }
 0x2a0   :  { %v901_v25 = vadd.f32 %v1735_v24, %v2295_v39  ;;  %v892_v26 = vpop.f32.mrb[41].mxu1  ;;  %v1755_v27 = vpop.f32.mrb[40].mxu0 }
 0x2a1   :  { %v893_v28 = vadd.f32 %v2295_v39, %v892_v26  ;;  %v1149_v29 = vadd.f32 %v1755_v27, %v2300_v3  ;;  %v1736_v30 = vpop.f32.mrb[42].mxu1  ;;  %v1140_v33 = vpop.f32.mrb[41].mxu0 }
 0x2a2   :  { %v1542_v37 = vmul.f32 -1.442695, %v901_v25  ;;  %v904_v43 = vadd.f32 %v1736_v30, %v2295_v39  ;;  %v1141_v44 = vadd.f32 %v2300_v3, %v1140_v33  ;;  %v895_v34 = vpop.f32.mrb[43].mxu1  ;;  %v1756_v49 = vpop.f32.mrb[42].mxu0 }
 0x2a3   :  { %v1540_v51 = vmul.f32 -1.442695, %v893_v28  ;;  %v1569_v52 = vmul.f32 -1.442695, %v1149_v29  ;;  %v896_v54 = vadd.f32 %v2295_v39, %v895_v34  ;;  %v1152_v55 = vadd.f32 %v1756_v49, %v2300_v3  ;;  %v1143_v56 = vpop.f32.mrb[43].mxu0 }
 0x2a4   :  { %1812 = vpow2.f32 %v1542_v37  ;;  %v1543_v57 = vmul.f32 -1.442695, %v904_v43  ;;  %v1567_v36 = vmul.f32 -1.442695, %v1141_v44  ;;  %v1144_v58 = vadd.f32 %v2300_v3, %v1143_v56 }
 0x2a5   :  { %1814 = vpow2.f32 %v1540_v51  ;;  %v1541_v32 = vmul.f32 -1.442695, %v896_v54  ;;  %v1570_v38 = vmul.f32 -1.442695, %v1152_v55 }
 0x2a6   :  { %1816 = vpow2.f32 %v1569_v52  ;;  %v1568_v6 = vmul.f32 -1.442695, %v1144_v58 }
 0x2a7   :  { %1818 = vpow2.f32 %v1543_v57 }
 0x2a8   :  { %1820 = vpow2.f32 %v1567_v36 }
 0x2a9   :  { %1822 = vpow2.f32 %v1541_v32 }
 0x2aa   :  { %1824 = vpow2.f32 %v1570_v38 }
 0x2ab   :  { %1826 = vpow2.f32 %v1568_v6 }
 0x2ae   :  { %v1813_v35 = vpop.eup %1812 }
 0x2af   :  { %v1815_v41 = vpop.eup %1814  ;;  %v1005_v60 = vadd.f32 1.0, %v1813_v35  ;;  %v1739_v62 = vpop.f32.mrb[44].mxu1 }
 0x2b0   :  { %v1817_v63 = vpop.eup %1816  ;;  %v1003_v1 = vadd.f32 1.0, %v1815_v41  ;;  %v908_v4 = vpop.f32.mrb[45].mxu1  ;;  %v917_v9 = vadd.f32 %v1739_v62, %v2295_v39 }
 0x2b1   :  { %v1759_v5 = vpop.f32.mrb[44].mxu0  ;;  %v1819_v7 = vpop.eup %1818  ;;  %1828 = vrcp.f32 %v1005_v60  ;;  %v1253_v8 = vadd.f32 1.0, %v1817_v63  ;;  %v909_v15 = vadd.f32 %v2295_v39, %v908_v4 }
 0x2b2   :  { %v1740_v10 = vpop.f32.mrb[46].mxu1  ;;  %v1156_v11 = vpop.f32.mrb[45].mxu0  ;;  %1830 = vrcp.f32 %v1003_v1  ;;  %v1006_v13 = vadd.f32 1.0, %v1819_v7  ;;  %v1165_v23 = vadd.f32 %v1759_v5, %v2300_v3  ;;  %v1546_v30 = vmul.f32 -1.442695, %v917_v9 }
 0x2b3   :  { %v1821_v12 = vpop.eup %1820  ;;  %v911_v16 = vpop.f32.mrb[47].mxu1  ;;  %1832 = vrcp.f32 %v1253_v8  ;;  %v920_v27 = vadd.f32 %v1740_v10, %v2295_v39  ;;  %v1157_v33 = vadd.f32 %v2300_v3, %v1156_v11  ;;  %v1544_v43 = vmul.f32 -1.442695, %v909_v15 }
 0x2b4   :  { %v1760_v18 = vpop.f32.mrb[46].mxu0  ;;  %v1823_v19 = vpop.eup %1822  ;;  %v1251_v21 = vadd.f32 1.0, %v1821_v12  ;;  %1834 = vrcp.f32 %v1006_v13  ;;  %v912_v44 = vadd.f32 %v2295_v39, %v911_v16  ;;  %v1573_v34 = vmul.f32 -1.442695, %v1165_v23 }
 0x2b5   :  { %v1159_v24 = vpop.f32.mrb[47].mxu0  ;;  %v1825_v25 = vpop.eup %1824  ;;  %v1004_v26 = vadd.f32 1.0, %v1823_v19  ;;  %v1168_v49 = vadd.f32 %v1760_v18, %v2300_v3  ;;  %v1547_v51 = vmul.f32 -1.442695, %v920_v27  ;;  %v1571_v54 = vmul.f32 -1.442695, %v1157_v33 }
 0x2b6   :  { %v1827_v28 = vpop.eup %1826  ;;  %1836 = vrcp.f32 %v1251_v21  ;;  %v1254_v29 = vadd.f32 1.0, %v1825_v25  ;;  %v1160_v52 = vadd.f32 %v2300_v3, %v1159_v24  ;;  %v1545_v55 = vmul.f32 -1.442695, %v912_v44 }
 0x2b7   :  { %1838 = vrcp.f32 %v1004_v26  ;;  %v1252_v37 = vadd.f32 1.0, %v1827_v28  ;;  %v1574_v57 = vmul.f32 -1.442695, %v1168_v49 }
 0x2b8   :  { %1840 = vrcp.f32 %v1254_v29  ;;  %v1572_v58 = vmul.f32 -1.442695, %v1160_v52 }
 0x2b9   :  { %1842 = vrcp.f32 %v1252_v37 }
 0x2ba   :  { %1844 = vpow2.f32 %v1546_v30 }
 0x2bb   :  { %1846 = vpow2.f32 %v1544_v43  ;;  %v1829_v56 = vpop.eup %1828 }
 0x2bc   :  { %1848 = vpow2.f32 %v1573_v34  ;;  %v1831_v36 = vpop.eup %1830  ;;  %1319 = vrot.lane.b32.xlu1 %v1829_v56, %s1941_s8 }
 0x2bd   :  { %1850 = vpow2.f32 %v1547_v51  ;;  %v1833_v32 = vpop.eup %1832  ;;  %1315 = vrot.lane.b32.xlu0 %v1831_v36, %s1941_s8 }
 0x2be   :  { %1852 = vpow2.f32 %v1571_v54  ;;  %v1835_v38 = vpop.eup %1834 }
 0x2bf   :  { %1854 = vpow2.f32 %v1545_v55  ;;  %v1743_v35 = vpop.f32.mrb[48].mxu1 }
 0x2c0   :  { %v1837_v6 = vpop.eup %1836  ;;  %1856 = vpow2.f32 %v1574_v57  ;;  %v933_v60 = vadd.f32 %v1743_v35, %v2295_v39  ;;  %v1763_v62 = vpop.f32.mrb[48].mxu0  ;;  %1321 = vrot.lane.b32.xlu1 %v1835_v38, %s1941_s8 }
 0x2c1   :  { %v1839_v41 = vpop.eup %1838  ;;  %1858 = vpow2.f32 %v1572_v58  ;;  %v924_v63 = vpop.f32.mrb[49].mxu1  ;;  %v1181_v4 = vadd.f32 %v1763_v62, %v2300_v3  ;;  %1383 = vrot.lane.b32.xlu0 %v1833_v32, %s1942_s10 }
 0x2c2   :  { %v1841_v1 = vpop.eup %1840  ;;  %v1744_v5 = vpop.f32.mrb[50].mxu1  ;;  %v1550_v9 = vmul.f32 -1.442695, %v933_v60  ;;  %v925_v25 = vadd.f32 %v2295_v39, %v924_v63 }
 0x2c3   :  { %v1172_v7 = vpop.f32.mrb[49].mxu0  ;;  %v1843_v8 = vpop.eup %1842  ;;  %v1577_v13 = vmul.f32 -1.442695, %v1181_v4  ;;  %v936_v28 = vadd.f32 %v1744_v5, %v2295_v39 }
 0x2c4   :  { %v927_v10 = vpop.f32.mrb[51].mxu1  ;;  %v1764_v11 = vpop.f32.mrb[50].mxu0  ;;  %1860 = vpow2.f32 %v1550_v9  ;;  %1385 = vrot.lane.b32.xlu1 %v1841_v1, %s1942_s10  ;;  %v1173_v49 = vadd.f32 %v2300_v3, %v1172_v7  ;;  %v1548_v56 = vmul.f32 -1.442695, %v925_v25 }
 0x2c5   :  { %v1845_v12 = vpop.eup %1844  ;;  %v1175_v15 = vpop.f32.mrb[51].mxu0  ;;  %1379 = vrot.lane.b32.xlu0 %v1837_v6, %s1942_s10  ;;  %v1551_v58 = vmul.f32 -1.442695, %v936_v28  ;;  %v928_v32 = vadd.f32 %v2295_v39, %v927_v10  ;;  %v1184_v35 = vadd.f32 %v1764_v11, %v2300_v3 }
 0x2c6   :  { %v1847_v16 = vpop.eup %1846  ;;  %v1009_v18 = vadd.f32 1.0, %v1845_v12  ;;  %v1575_v60 = vmul.f32 -1.442695, %v1173_v49 }
 0x2c7   :  { %v1849_v19 = vpop.eup %1848  ;;  %v1007_v21 = vadd.f32 1.0, %v1847_v16  ;;  %v1747_v29 = vpop.f32.mrb[52].mxu1  ;;  %v1549_v5 = vmul.f32 -1.442695, %v928_v32 }
 0x2c8   :  { %v1851_v23 = vpop.eup %1850  ;;  %1862 = vrcp.f32 %v1009_v18  ;;  %v1257_v24 = vadd.f32 1.0, %v1849_v19  ;;  %v2328_v37 = vpop.f32.mrb[52].mxu0  ;;  %1381 = vrot.lane.b32.xlu1 %v1843_v8, %s1942_s10  ;;  %v949_v1 = vadd.f32 %v1747_v29, %v2295_v39  ;;  %v1578_v8 = vmul.f32 -1.442695, %v1184_v35 }
 0x2c9   :  { %v1853_v26 = vpop.eup %1852  ;;  %v1010_v27 = vadd.f32 1.0, %v1851_v23  ;;  %1864 = vpow2.f32 %v1577_v13  ;;  %v940_v43 = vpop.f32.mrb[53].mxu1  ;;  %1317 = vrot.lane.b32.xlu0 %v1839_v41, %s1941_s8  ;;  %v1176_v41 = vadd.f32 %v2300_v3, %v1175_v15 }
 0x2ca   :  { %v1855_v30 = vpop.eup %1854  ;;  %1866 = vrcp.f32 %v1007_v21  ;;  %v1255_v33 = vadd.f32 1.0, %v1853_v26  ;;  %v1748_v51 = vpop.f32.mrb[54].mxu1  ;;  %v941_v11 = vadd.f32 %v2295_v39, %v940_v43  ;;  %v1554_v13 = vmul.f32 -1.442695, %v949_v1 }
 0x2cb   :  { %v1857_v44 = vpop.eup %1856  ;;  %1868 = vrcp.f32 %v1010_v27  ;;  %v1008_v34 = vadd.f32 1.0, %v1855_v30  ;;  %v1188_v52 = vpop.f32.mrb[53].mxu0  ;;  %v1576_v10 = vmul.f32 -1.442695, %v1176_v41  ;;  %v952_v15 = vadd.f32 %v1748_v51, %v2295_v39 }
 0x2cc   :  { %v1859_v54 = vpop.eup %1858  ;;  %1870 = vrcp.f32 %v1257_v24  ;;  %v1258_v55 = vadd.f32 1.0, %v1857_v44  ;;  %v943_v57 = vpop.f32.mrb[55].mxu1  ;;  %v1552_v21 = vmul.f32 -1.442695, %v941_v11  ;;  %v1189_v25 = vadd.f32 %v2300_v3, %v1188_v52 }
 0x2cd   :  { %v1768_v36 = vpop.f32.mrb[54].mxu0  ;;  %1872 = vrcp.f32 %v1255_v33  ;;  %v1256_v6 = vadd.f32 1.0, %v1859_v54  ;;  %v1555_v24 = vmul.f32 -1.442695, %v952_v15  ;;  %v944_v27 = vadd.f32 %v2295_v39, %v943_v57 }
 0x2ce   :  { %v2334_v38 = vpop.f32.mrb[55].mxu0  ;;  %1874 = vrcp.f32 %v1008_v34  ;;  %v2339_v62 = vadd.f32 %v1768_v36, %v2300_v3  ;;  %v1861_v63 = vpop.eup %1860  ;;  %v1197_v34 = vadd.f32 %v2328_v37, %v2300_v3  ;;  %v1579_v49 = vmul.f32 -1.442695, %v1189_v25 }
 0x2cf   :  { %1876 = vrcp.f32 %v1258_v55  ;;  %v1013_v4 = vadd.f32 1.0, %v1861_v63  ;;  %v1553_v52 = vmul.f32 -1.442695, %v944_v27 }
 0x2d0   :  { %1878 = vpow2.f32 %v1548_v56  ;;  %v1581_v57 = vmul.f32 -1.442695, %v1197_v34  ;;  %v1582_v35 = vmul.f32 -1.442695, %v2339_v62 }
 0x2d1   :  { %1880 = vpow2.f32 %v1551_v58 }
 0x2d2   :  { %v1863_v7 = vpop.eup %1862  ;;  %1882 = vrcp.f32 %v1256_v6  ;;  %v1192_v6 = vadd.f32 %v2300_v3, %v2334_v38 }
 0x2d3   :  { %v1865_v9 = vpop.eup %1864  ;;  %1884 = vpow2.f32 %v1575_v60  ;;  %1327 = vrot.lane.b32.xlu0 %v1863_v7, %s1941_s8 }
 0x2d4   :  { %v1867_v12 = vpop.eup %1866  ;;  %1886 = vrcp.f32 %v1013_v4  ;;  %v1261_v30 = vadd.f32 1.0, %v1865_v9  ;;  %v1580_v4 = vmul.f32 -1.442695, %v1192_v6 }
 0x2d5   :  { %v1869_v16 = vpop.eup %1868  ;;  %1888 = vpow2.f32 %v1549_v5 }
 0x2d6   :  { %v1871_v18 = vpop.eup %1870  ;;  %1890 = vpow2.f32 %v1578_v8  ;;  %1329 = vrot.lane.b32.xlu1 %v1869_v16, %s1941_s8 }
 0x2d7   :  { %v1873_v19 = vpop.eup %1872  ;;  %1892 = vpow2.f32 %v1576_v10  ;;  %1323 = vrot.lane.b32.xlu0 %v1867_v12, %s1941_s8 }
 0x2d8   :  { %v1875_v23 = vpop.eup %1874  ;;  %1894 = vpow2.f32 %v1554_v13 }
 0x2d9   :  { %v1877_v26 = vpop.eup %1876  ;;  %1896 = vpow2.f32 %v1552_v21 }
 0x2da   :  { %v1879_v28 = vpop.eup %1878  ;;  %1325 = vrot.lane.b32.xlu1 %v1875_v23, %s1941_s8  ;;  %1898 = vpow2.f32 %v1555_v24 }
 0x2db   :  { %v1881_v29 = vpop.eup %1880  ;;  %v1011_v33 = vadd.f32 1.0, %v1879_v28  ;;  %1391 = vrot.lane.b32.xlu0 %v1871_v18, %s1942_s10 }
 0x2dc   :  { %v1883_v43 = vpop.eup %1882  ;;  %v1014_v44 = vadd.f32 1.0, %v1881_v29 }
 0x2dd   :  { %v1885_v51 = vpop.eup %1884  ;;  %1900 = vrcp.f32 %v1011_v33 }
 0x2de   :  { %v1887_v39 = vpop.eup %1886  ;;  %1902 = vrcp.f32 %v1014_v44  ;;  %1393 = vrot.lane.b32.xlu1 %v1877_v26, %s1942_s10  ;;  %v1259_v58 = vadd.f32 1.0, %v1885_v51  ;;  %v333_v51 = vadd.f32 %v2172_v42, %v2215_v46 }
 0x2df   :  { %v1889_v54 = vpop.eup %1888  ;;  %1904 = vrcp.f32 %v1261_v30  ;;  %1387 = vrot.lane.b32.xlu0 %v1873_v19, %s1942_s10 }
 0x2e0   :  { %v1891_v55 = vpop.eup %1890  ;;  %v1012_v56 = vadd.f32 1.0, %v1889_v54  ;;  %1906 = vpow2.f32 %v1579_v49 }
 0x2e1   :  { %v1893_v36 = vpop.eup %1892  ;;  %1908 = vpow2.f32 %v1553_v52  ;;  %v1262_v32 = vadd.f32 1.0, %v1891_v55  ;;  %v336_v55 = vadd.f32 %v2179_v48, %v2215_v46  ;;  %v328_v48 = vadd.f32 %v2183_v50, %v2215_v46 }
 0x2e2   :  { %v1895_v37 = vpop.eup %1894  ;;  %1910 = vrcp.f32 %v1012_v56  ;;  %1389 = vrot.lane.b32.xlu1 %v1883_v43, %s1942_s10  ;;  %v1260_v60 = vadd.f32 1.0, %v1893_v36 }
 0x2e3   :  { %1335 = vrot.lane.b32.xlu0 %v1887_v39, %s1941_s8  ;;  %1912 = vpow2.f32 %v1581_v57  ;;  %v1897_v41 = vpop.eup %1896  ;;  %v1017_v63 = vadd.f32 1.0, %v1895_v37  ;;  %v325_v57 = vadd.f32 %v2175_v45, %v2215_v46 }
 0x2e4   :  { %1914 = vrcp.f32 %v1259_v58  ;;  %v1899_v1 = vpop.eup %1898  ;;  %v1015_v38 = vadd.f32 1.0, %v1897_v41 }
 0x2e5   :  { %1916 = vrcp.f32 %v1262_v32  ;;  %v1018_v8 = vadd.f32 1.0, %v1899_v1 }
 0x2e6   :  { %1918 = vpow2.f32 %v1582_v35 }
 0x2e7   :  { %v1901_v5 = vpop.eup %1900  ;;  %1920 = vrcp.f32 %v1260_v60 }
 0x2e8   :  { %v1903_v7 = vpop.eup %1902  ;;  %1331 = vrot.lane.b32.xlu0 %v1901_v5, %s1941_s8  ;;  %1922 = vrcp.f32 %v1017_v63  ;;  %v349_v5 = vadd.f32 %v2186_v59, %v2215_v46 }
 0x2e9   :  { %v1905_v3 = vpop.eup %1904  ;;  %1337 = vrot.lane.b32.xlu1 %v1903_v7, %s1941_s8  ;;  %1924 = vpow2.f32 %v1580_v4 }
 0x2ea   :  { %v1907_v62 = vpop.eup %1906  ;;  %1926 = vrcp.f32 %v1015_v38  ;;  %v352_v38 = vadd.f32 %v2192_v0, %v2215_v46  ;;  %v344_v0 = vadd.f32 %v2195_v2, %v2215_v46 }
 0x2eb   :  { %v1909_v9 = vpop.eup %1908  ;;  %v1263_v11 = vadd.f32 1.0, %v1907_v62  ;;  %1928 = vrcp.f32 %v1018_v8  ;;  %v341_v8 = vadd.f32 %v2189_v61, %v2215_v46 }
 0x2ec   :  { %v1911_v10 = vpop.eup %1910  ;;  %1399 = vrot.lane.b32.xlu0 %v1905_v3, %s1942_s10  ;;  %v1016_v13 = vadd.f32 1.0, %v1909_v9 }
 0x2ed   :  { %1333 = vrot.lane.b32.xlu1 %v1911_v10, %s1941_s8  ;;  %v1913_v12 = vpop.eup %1912  ;;  %1930 = vrcp.f32 %v1263_v11 }
 0x2ee   :  { %v1915_v15 = vpop.eup %1914  ;;  %v1265_v19 = vadd.f32 1.0, %v1913_v12  ;;  %1932 = vrcp.f32 %v1016_v13 }
 0x2ef   :  { %v1917_v16 = vpop.eup %1916 }
 0x2f0   :  { %1395 = vrot.lane.b32.xlu0 %v1915_v15, %s1942_s10  ;;  %v1919_v18 = vpop.eup %1918  ;;  %1934 = vrcp.f32 %v1265_v19 }
 0x2f1   :  { %1401 = vrot.lane.b32.xlu1 %v1917_v16, %s1942_s10  ;;  %v1921_v21 = vpop.eup %1920  ;;  %v1266_v27 = vadd.f32 1.0, %v1919_v18 }
 0x2f2   :  { %v1923_v23 = vpop.eup %1922 }
 0x2f3   :  { %v1925_v24 = vpop.eup %1924 }
 0x2f4   :  { %1343 = vrot.lane.b32.xlu0 %v1923_v23, %s1941_s8  ;;  %v1264_v25 = vadd.f32 1.0, %v1925_v24  ;;  %v1927_v26 = vpop.eup %1926 }
 0x2f5   :  { %1397 = vrot.lane.b32.xlu1 %v1921_v21, %s1942_s10  ;;  %v1929_v28 = vpop.eup %1928  ;;  %v365_v21 = vadd.f32 %v2198_v14, %v2215_v46 }
 0x2f6   :  { %1936 = vrcp.f32 %v1264_v25 }
 0x2f7   :  { %v1931_v29 = vpop.eup %1930  ;;  %1938 = vrcp.f32 %v1266_v27  ;;  %v357_v27 = vadd.f32 %v2201_v17, %v2215_v46  ;;  %v360_v17 = vadd.f32 %v2207_v22, %v2215_v46  ;;  %v373_v22 = vadd.f32 %v2217_v47, %v2215_v46 }
 0x2f8   :  { %1339 = vrot.lane.b32.xlu0 %v1927_v26, %s1941_s8  ;;  %v1933_v30 = vpop.eup %1932 }
 0x2f9   :  { %1345 = vrot.lane.b32.xlu1 %v1929_v28, %s1941_s8  ;;  %v368_v28 = vadd.f32 %v2204_v20, %v2215_v46 }
 0x2fa   :  { %v1935_v33 = vpop.eup %1934 }
 0x2fc   :  { %1403 = vrot.lane.b32.xlu0 %v1931_v29, %s1942_s10 }
 0x2fd   :  { %1341 = vrot.lane.b32.xlu1 %v1933_v30, %s1941_s8 }
 0x300   :  { %1407 = vrot.lane.b32.xlu0 %v1935_v33, %s1942_s10  ;;  %v1937_v43 = vpop.eup %1936 }
 0x301   :  { %1405 = vrot.lane.b32.xlu1 %v1937_v43, %s1942_s10  ;;  %v1939_v44 = vpop.eup %1938 }
 0x305   :  { %1409 = vrot.lane.b32.xlu1 %v1939_v44, %s1942_s10 }
 0x32e   :  { %v1320_v34 = vpop.permute.xlu1 %1319 }
 0x32f   :  { %v1316_v49 = vpop.permute.xlu0 %1315  ;;  %v1430_v39 = vsel %vm1427_vm1, %v333_v51, %v1320_v34 }
 0x330   :  { %v1428_v58 = vsel %vm1427_vm1, %v325_v57, %v1316_v49 }
 0x332   :  { %v1322_v52 = vpop.permute.xlu1 %1321 }
 0x333   :  { %v1384_v54 = vpop.permute.xlu0 %1383  ;;  %v1431_v42 = vsel %vm1427_vm1, %v336_v55, %v1322_v52 }
 0x334   :  { %v1447_v56 = vsel %vm1444_vm2, %v1430_v39, %v1384_v54 }
 0x335   :  { %1463 = vst.msk [vmem:[%s2512_s11 + $0x10] sm:$0xff] %vm152_vm0, %v1447_v56 }
 0x336   :  { %v1386_v36 = vpop.permute.xlu1 %1385 }
 0x337   :  { %v1448_v37 = vsel %vm1444_vm2, %v1431_v42, %v1386_v36  ;;  %v1380_v32 = vpop.permute.xlu0 %1379  ;;  %v381_v36 = vadd.f32 %v2211_v40, %v2215_v46 }
 0x338   :  { %1464 = vst.msk [vmem:[%s2512_s11 + $0x18] sm:$0xff] %vm152_vm0, %v1448_v37  ;;  %v1445_v45 = vsel %vm1444_vm2, %v1428_v58, %v1380_v32 }
 0x339   :  { %1461 = vst.msk [vmem:[%s2512_s11] sm:$0xff] %vm152_vm0, %v1445_v45 }
 0x33a   :  { %v1382_v35 = vpop.permute.xlu1 %1381 }
 0x33b   :  { %v1318_v6 = vpop.permute.xlu0 %1317 }
 0x33c   :  { %v1429_v60 = vsel %vm1427_vm1, %v328_v48, %v1318_v6 }
 0x33d   :  { %v1446_v41 = vsel %vm1444_vm2, %v1429_v60, %v1382_v35 }
 0x33e   :  { %1462 = vst.msk [vmem:[%s2512_s11 + $0x8] sm:$0xff] %vm152_vm0, %v1446_v41 }
 0x345   :  { %v1328_v63 = vpop.permute.xlu0 %1327 }
 0x346   :  { %v1434_v50 = vsel %vm1427_vm1, %v349_v5, %v1328_v63 }
 0x348   :  { %v1330_v1 = vpop.permute.xlu1 %1329 }
 0x349   :  { %v1324_v4 = vpop.permute.xlu0 %1323  ;;  %v1435_v9 = vsel %vm1427_vm1, %v352_v38, %v1330_v1 }
 0x34a   :  { %v1432_v10 = vsel %vm1427_vm1, %v341_v8, %v1324_v4 }
 0x34c   :  { %v1326_v7 = vpop.permute.xlu1 %1325 }
 0x34d   :  { %v1392_v3 = vpop.permute.xlu0 %1391  ;;  %v1433_v13 = vsel %vm1427_vm1, %v344_v0, %v1326_v7 }
 0x34e   :  { %v1451_v62 = vsel %vm1444_vm2, %v1434_v50, %v1392_v3 }
 0x34f   :  { %1467 = vst.msk [vmem:[%s2512_s11 + $0x30] sm:$0xff] %vm152_vm0, %v1451_v62 }
 0x350   :  { %v1394_v59 = vpop.permute.xlu1 %1393 }
 0x351   :  { %v1452_v11 = vsel %vm1444_vm2, %v1435_v9, %v1394_v59  ;;  %v1388_v12 = vpop.permute.xlu0 %1387 }
 0x352   :  { %1468 = vst.msk [vmem:[%s2512_s11 + $0x38] sm:$0xff] %vm152_vm0, %v1452_v11  ;;  %v1449_v61 = vsel %vm1444_vm2, %v1432_v10, %v1388_v12 }
 0x353   :  { %1465 = vst.msk [vmem:[%s2512_s11 + $0x20] sm:$0xff] %vm152_vm0, %v1449_v61 }
 0x354   :  { %v1390_v15 = vpop.permute.xlu1 %1389 }
 0x355   :  { %v1450_v16 = vsel %vm1444_vm2, %v1433_v13, %v1390_v15  ;;  %v1336_v18 = vpop.permute.xlu0 %1335 }
 0x356   :  { %1466 = vst.msk [vmem:[%s2512_s11 + $0x28] sm:$0xff] %vm152_vm0, %v1450_v16  ;;  %v1438_v23 = vsel %vm1427_vm1, %v365_v21, %v1336_v18 }
 0x35a   :  { %v1332_v2 = vpop.permute.xlu0 %1331 }
 0x35b   :  { %v1338_v19 = vpop.permute.xlu1 %1337  ;;  %v1436_v29 = vsel %vm1427_vm1, %v357_v27, %v1332_v2 }
 0x35c   :  { %v1439_v30 = vsel %vm1427_vm1, %v368_v28, %v1338_v19 }
 0x35e   :  { %v1400_v24 = vpop.permute.xlu0 %1399 }
 0x35f   :  { %v1334_v25 = vpop.permute.xlu1 %1333  ;;  %v1455_v26 = vsel %vm1444_vm2, %v1438_v23, %v1400_v24 }
 0x360   :  { %1471 = vst.msk [vmem:[%s2512_s11 + $0x50] sm:$0xff] %vm152_vm0, %v1455_v26  ;;  %v1437_v34 = vsel %vm1427_vm1, %v360_v17, %v1334_v25 }
 0x362   :  { %v1396_v14 = vpop.permute.xlu0 %1395 }
 0x363   :  { %v1402_v33 = vpop.permute.xlu1 %1401  ;;  %v1453_v43 = vsel %vm1444_vm2, %v1436_v29, %v1396_v14 }
 0x364   :  { %v1456_v44 = vsel %vm1444_vm2, %v1439_v30, %v1402_v33  ;;  %1469 = vst.msk [vmem:[%s2512_s11 + $0x40] sm:$0xff] %vm152_vm0, %v1453_v43 }
 0x365   :  { %1472 = vst.msk [vmem:[%s2512_s11 + $0x58] sm:$0xff] %vm152_vm0, %v1456_v44 }
 0x366   :  { %v1344_v20 = vpop.permute.xlu0 %1343 }
 0x367   :  { %v1398_v49 = vpop.permute.xlu1 %1397  ;;  %v1442_v58 = vsel %vm1427_vm1, %v381_v36, %v1344_v20 }
 0x368   :  { %v1454_v51 = vsel %vm1444_vm2, %v1437_v34, %v1398_v49 }
 0x369   :  { %1470 = vst.msk [vmem:[%s2512_s11 + $0x48] sm:$0xff] %vm152_vm0, %v1454_v51 }
 0x36a   :  { %v1340_v52 = vpop.permute.xlu0 %1339 }
 0x36b   :  { %v1346_v39 = vpop.permute.xlu1 %1345  ;;  %v1440_v55 = vsel %vm1427_vm1, %v373_v22, %v1340_v52 }
 0x36c   :  { %v1443_v54 = vsel %vm1427_vm1, %v2222_v53, %v1346_v39 }
 0x36e   :  { %v1404_v56 = vpop.permute.xlu0 %1403 }
 0x36f   :  { %v1342_v57 = vpop.permute.xlu1 %1341  ;;  %v1457_v42 = vsel %vm1444_vm2, %v1440_v55, %v1404_v56 }
 0x370   :  { %1473 = vst.msk [vmem:[%s2512_s11 + $0x60] sm:$0xff] %vm152_vm0, %v1457_v42  ;;  %v1441_v53 = vsel %vm1427_vm1, %v2225_v31, %v1342_v57 }
 0x372   :  { %v1408_v47 = vpop.permute.xlu0 %1407 }
 0x373   :  { %v1459_v37 = vsel %vm1444_vm2, %v1442_v58, %v1408_v47  ;;  %v1406_v32 = vpop.permute.xlu1 %1405 }
 0x374   :  { %1475 = vst.msk [vmem:[%s2512_s11 + $0x70] sm:$0xff] %vm152_vm0, %v1459_v37  ;;  %v1458_v40 = vsel %vm1444_vm2, %v1441_v53, %v1406_v32 }
 0x375   :  { %1474 = vst.msk [vmem:[%s2512_s11 + $0x68] sm:$0xff] %vm152_vm0, %v1458_v40 }
 0x377   :  { %v1410_v46 = vpop.permute.xlu1 %1409 }
 0x378   :  { %v1460_v45 = vsel %vm1444_vm2, %v1443_v54, %v1410_v46 }
 0x379   :  { %1476 = vst.msk [vmem:[%s2512_s11 + $0x78] sm:$0xff] %vm152_vm0, %v1460_v45 }

</bundles_post_ra>
